<compile_context>
chip_gen: v7x
topology: tpu7x:2x2x1
jax: 0.10.0
libtpu: 0.0.40
codegen_flags: <defaults>
</compile_context>

<pallas_src>
import functools

import jax
import jax.numpy as jnp
from jax import lax
from jax.experimental import pallas as pl
from jax.experimental.pallas import tpu as pltpu

EPS = 1e-5
TM_MAX = 1024   # max rows of flattened output pixels per grid step
LANE = 128      # K (contraction) padding granule


def _round_up(x, m):
    return ((x + m - 1) // m) * m


def _cdiv(a, b):
    return -(-a // b)


# ---------------------------------------------------------------------------
# Pallas kernel: one lane-dense GEMM per tile (bf16 operands, f32 accumulate),
# optional in-kernel tanh, narrow (true-channel) f32 store.
# ---------------------------------------------------------------------------
def _gemm_act_kernel(a_ref, w_ref, o_ref, *, apply_tanh):
    acc = jnp.dot(a_ref[...], w_ref[...], preferred_element_type=jnp.float32)
    if apply_tanh:
        acc = jnp.tanh(acc)                      # f32 tanh (EUP)
    o_ref[...] = acc


def _choose_tiling(m):
    """Large tiles, but grid >= 2 when possible (v7x megacore); tm multiple of 16."""
    m8 = _round_up(m, 8)
    if m8 <= 16:
        return m8, 1                             # single tile == full array dim
    tm = min(TM_MAX, _round_up(_cdiv(m8, 2), 16))
    return tm, _cdiv(m8, tm)


def _gemm_conv(a, w, *, apply_tanh):
    """One conv as a single GEMM: im2col'd A (M, K) x packed W (K_pad, Cout_p)."""
    m, k = a.shape
    kpad, coutp = w.shape
    tm, tiles = _choose_tiling(m)
    m_pad = tm * tiles
    a = jnp.pad(a.astype(jnp.bfloat16), ((0, m_pad - m), (0, kpad - k)))

    kern = functools.partial(_gemm_act_kernel, apply_tanh=apply_tanh)
    cost = pl.CostEstimate(                      # true (unpadded) work
        flops=2 * m * k * coutp,
        transcendentals=(m * coutp if apply_tanh else 0),
        bytes_accessed=m * k * 2 + kpad * coutp * 2 + m * coutp * 4,
    )
    out = pl.pallas_call(
        kern,
        out_shape=jax.ShapeDtypeStruct((m_pad, coutp), jnp.float32),
        grid=(tiles,),
        in_specs=[
            pl.BlockSpec((tm, kpad), lambda i: (i, 0)),
            pl.BlockSpec((kpad, coutp), lambda i: (0, 0)),   # weights resident
        ],
        out_specs=pl.BlockSpec((tm, coutp), lambda i: (i, 0)),
        compiler_params=pltpu.CompilerParams(
            dimension_semantics=("parallel",),   # shard tiles on v7x's 2 TCs
        ),
        cost_estimate=cost,
    )(a, w)
    return out[:m]


# ---------------------------------------------------------------------------
# Wrapper-side glue (plain XLA; fuses into one producer per conv): folded BN
# affine + activation, pad, tap-fold (im2col) into K.
# ---------------------------------------------------------------------------
def _act(x, act):
    if act == "lrelu":
        return jnp.where(x > 0, x, 0.2 * x)
    if act == "relu":
        return jnp.maximum(x, 0.0)
    return x


def _im2col_down(y):
    """All 16 k4/s2/p1 taps folded into K: (n,h,w,c) -> (n*(h//2)*(w//2), 16*c)."""
    n, h, w, c = y.shape
    oh, ow = h // 2, w // 2
    yp = jnp.pad(y, ((0, 0), (1, 1), (1, 1), (0, 0)))
    cols = [yp[:, kh:kh + 2 * oh:2, kw:kw + 2 * ow:2, :]
            for kh in range(4) for kw in range(4)]
    return jnp.concatenate(cols, axis=-1).reshape(n * oh * ow, 16 * c)


def _im2col_up(y):
    """3x3 super-pixel neighbourhood folded into K: (n,h,w,c) -> (n*h*w, 9*c)."""
    n, h, w, c = y.shape
    yp = jnp.pad(y, ((0, 0), (1, 1), (1, 1), (0, 0)))
    cols = [yp[:, sr:sr + h, sc:sc + w, :] for sr in range(3) for sc in range(3)]
    return jnp.concatenate(cols, axis=-1).reshape(n * h * w, 9 * c)


def conv_down(xt, w, cout, act):
    """Conv2d(Cin, cout, k=4, s=2, p=1, bias=False) on a (raw, scale, bias) triple."""
    x, s, b = xt
    n, h, w_sp, _ = x.shape
    y = _act(x * s + b, act)                     # folded BN affine + act (f32)
    a = _im2col_down(y)
    out = _gemm_conv(a, w, apply_tanh=False)
    return out[:, :cout].reshape(n, h // 2, w_sp // 2, cout)


def conv_up(xt, w, cout, act, apply_tanh):
    """ConvTranspose2d(Cin, cout, k=4, s=2, p=1, bias=False) on a (raw, scale, bias) triple."""
    x, s, b = xt
    n, h, w_sp, _ = x.shape
    y = _act(x * s + b, act)
    a = _im2col_up(y)
    out = _gemm_conv(a, w, apply_tanh=apply_tanh)
    y4 = out[:, :4 * cout].reshape(n, h, w_sp, 2, 2, cout)
    y4 = y4.transpose(0, 1, 3, 2, 4, 5)
    return y4.reshape(n, 2 * h, 2 * w_sp, cout)  # depth-to-space


# ---------------------------------------------------------------------------
# Weight packing (hoisted to parameter construction): single (K_pad, Cout_p)
# bf16 matrix per conv; K zero-padded to 128 multiples, Cout to 8 multiples.
# ---------------------------------------------------------------------------
def pack_down_weights(w):                        # w: (Cout, Cin, 4, 4) torch layout
    cout, cin = w.shape[0], w.shape[1]
    wt = jnp.transpose(w, (2, 3, 1, 0)).reshape(16 * cin, cout)   # rows = (kh,kw,ci)
    kpad, cpad = _round_up(16 * cin, LANE), _round_up(cout, 8)
    return jnp.pad(wt, ((0, kpad - 16 * cin), (0, cpad - cout))).astype(jnp.bfloat16)


def pack_up_weights(w):                          # w: (Cin, Cout, 4, 4) torch layout
    cin, cout = w.shape[0], w.shape[1]
    rows = []
    for sr in range(3):                          # rows = (sr,sc,ci); cols = (pr,pc,co)
        for sc in range(3):
            cols = []
            for pr in range(2):
                for pc in range(2):
                    kh, kw = 3 + pr - 2 * sr, 3 + pc - 2 * sc
                    if 0 <= kh < 4 and 0 <= kw < 4:
                        cols.append(w[:, :, kh, kw])              # (Cin, Cout)
                    else:
                        cols.append(jnp.zeros((cin, cout), w.dtype))
            rows.append(jnp.concatenate(cols, axis=1))            # (Cin, 4*Cout)
    wt = jnp.concatenate(rows, axis=0)                            # (9*Cin, 4*Cout)
    kpad, cpad = _round_up(9 * cin, LANE), _round_up(4 * cout, 8)
    return jnp.pad(wt, ((0, kpad - 9 * cin), (0, cpad - 4 * cout))).astype(jnp.bfloat16)


# ---------------------------------------------------------------------------
# Unet parameters + forward (mirrors Unet / UnetRecursion, train-mode BN)
# ---------------------------------------------------------------------------
def build_unet_params(key, in_ch=1, out_ch=2, n_filters=16, n_down=5):
    levels = []  # innermost -> outermost, mirroring Unet.__init__
    levels.append(dict(kind="inner", in_c=n_filters, down_out=n_filters,
                       up_in=n_filters, up_out=n_filters))
    for _ in range(n_down - 5):
        # TODO(synk): these middle levels carry nn.Dropout(0.5) in train mode;
        # not exercised at n_down=5.
        levels.append(dict(kind="mid", in_c=n_filters, down_out=n_filters,
                           up_in=2 * n_filters, up_out=n_filters))
    nf = n_filters
    for _ in range(3):
        levels.append(dict(kind="mid", in_c=nf // 2, down_out=nf,
                           up_in=2 * nf, up_out=nf // 2))
        nf //= 2
    levels.append(dict(kind="outer", in_c=in_ch, down_out=nf,
                       up_in=2 * nf, up_out=out_ch))

    for lv in levels:
        key, k1, k2, k3, k4, k5, k6 = jax.random.split(key, 7)
        dw = 0.02 * jax.random.normal(k1, (lv["down_out"], lv["in_c"], 4, 4), jnp.float32)
        uw = 0.02 * jax.random.normal(k2, (lv["up_in"], lv["up_out"], 4, 4), jnp.float32)
        p = {"dw": pack_down_weights(dw), "uw": pack_up_weights(uw)}
        if lv["kind"] == "mid":
            p["dg"] = 1.0 + 0.02 * jax.random.normal(k3, (lv["down_out"],), jnp.float32)
            p["db"] = 0.02 * jax.random.normal(k4, (lv["down_out"],), jnp.float32)
        if lv["kind"] in ("mid", "inner"):
            p["ug"] = 1.0 + 0.02 * jax.random.normal(k5, (lv["up_out"],), jnp.float32)
            p["ub"] = 0.02 * jax.random.normal(k6, (lv["up_out"],), jnp.float32)
        lv["params"] = p
    return levels


def _identity_t(y):
    c = y.shape[-1]
    return (y, jnp.ones((c,), jnp.float32), jnp.zeros((c,), jnp.float32))


def _bn_fold(y, g, b):
    # Exact train-mode BatchNorm2d (biased variance, eps=1e-5), folded into the
    # next conv's per-channel input affine.  Stats are computed from f32 conv
    # outputs, so bf16 matmul operands never contaminate BN statistics.
    mean = jnp.mean(y, axis=(0, 1, 2))
    var = jnp.mean(jnp.square(y - mean), axis=(0, 1, 2))
    scale = g * lax.rsqrt(var + EPS)
    bias = b - mean * scale
    return (y, scale, bias)


def _cat(a, b):
    return (jnp.concatenate([a[0], b[0]], axis=-1),
            jnp.concatenate([a[1], b[1]]),
            jnp.concatenate([a[2], b[2]]))


def _apply_level(xt, levels, idx):
    lv = levels[idx]
    p = lv["params"]
    if lv["kind"] == "outer":
        d = conv_down(xt, p["dw"], lv["down_out"], act=None)              # [downconv]
        st = _apply_level(_identity_t(d), levels, idx - 1)                # submodule
        return conv_up(st, p["uw"], lv["up_out"],
                       act="relu", apply_tanh=True)                       # [ReLU, upconv, Tanh]
    if lv["kind"] == "inner":
        d = conv_down(xt, p["dw"], lv["down_out"], act="lrelu")           # [LeakyReLU, downconv]
        u = conv_up(_identity_t(d), p["uw"], lv["up_out"],
                    act="relu", apply_tanh=False)                         # [ReLU, upconv]
        return _cat(xt, _bn_fold(u, p["ug"], p["ub"]))                    # upnorm folded; cat([x, u])
    # mid level
    d = conv_down(xt, p["dw"], lv["down_out"], act="lrelu")               # [LeakyReLU, downconv]
    st = _apply_level(_bn_fold(d, p["dg"], p["db"]), levels, idx - 1)     # downnorm folded into child
    u = conv_up(st, p["uw"], lv["up_out"], act="relu", apply_tanh=False)
    return _cat(xt, _bn_fold(u, p["ug"], p["ub"]))                        # cat([x, u])


def unet_forward(x_nchw, levels):
    x = jnp.transpose(x_nchw, (0, 2, 3, 1)).astype(jnp.float32)           # NCHW -> NHWC
    y = _apply_level(_identity_t(x), levels, len(levels) - 1)
    return jnp.transpose(y, (0, 3, 1, 2))                                 # NHWC -> NCHW


if __name__ == "__main__":
    key = jax.random.PRNGKey(0)
    pkey, xkey = jax.random.split(key)

    # Small config consistent with the module: Unet(input=1, output=2, n_filters=16, n_down=5)
    IN_CH, OUT_CH, N_FILTERS, N_DOWN = 1, 2, 16, 5
    N, H, W = 2, 32, 32  # spatial must be >= 2**n_down

    levels = build_unet_params(pkey, IN_CH, OUT_CH, N_FILTERS, N_DOWN)
    x = jax.random.normal(xkey, (N, IN_CH, H, W), jnp.float32)

    fwd = jax.jit(functools.partial(unet_forward, levels=levels))
    out = jax.block_until_ready(fwd(x))

    assert out.shape == (N, OUT_CH, H, W), out.shape
    assert bool(jnp.all(jnp.isfinite(out)))
    assert bool(jnp.all(jnp.abs(out) <= 1.0))  # final Tanh bound
    print("KERNEL_OK")
</pallas_src>

<mosaic_0001>
module attributes {stable_mosaic.version = 11 : i64} {
  func.func @_gemm_act_kernel(%arg0: i32, %arg1: memref<256x128xbf16, #tpu.memory_space<vmem>>, %arg2: memref<128x8xbf16, #tpu.memory_space<vmem>>, %arg3: memref<256x8xf32, #tpu.memory_space<vmem>>) attributes {dimension_semantics = [#tpu.dimension_semantics<parallel>], iteration_bounds = array<i64: 2>, scalar_prefetch = 0 : i64, scratch_operands = 0 : i64, tpu.core_type = #tpu.core_type<tc>, window_params = [{transform_indices = @transform_0, window_bounds = array<i64: 256, 128>}, {pipeline_mode = #tpu.pipeline_mode<synchronous>, transform_indices = @transform_1, window_bounds = array<i64: 128, 8>}, {transform_indices = @transform_2, window_bounds = array<i64: 256, 8>}]} {
    %c0 = arith.constant 0 : index
    %c0_0 = arith.constant 0 : index
    %0 = vector.load %arg1[%c0, %c0_0] : memref<256x128xbf16, #tpu.memory_space<vmem>>, vector<256x128xbf16>
    %c0_1 = arith.constant 0 : index
    %c0_2 = arith.constant 0 : index
    %1 = vector.load %arg2[%c0_1, %c0_2] : memref<128x8xbf16, #tpu.memory_space<vmem>>, vector<128x8xbf16>
    %cst = arith.constant dense<0.000000e+00> : vector<256x8xf32>
    %2 = tpu.matmul %0, %1, %cst {dimension_numbers = #tpu.dot_dimension_numbers<[1], [0], [0], [1], [0, 0, 1, 1], [], []>} : vector<256x128xbf16>, vector<128x8xbf16>, vector<256x8xf32> -> vector<256x8xf32>
    %c0_3 = arith.constant 0 : index
    %c0_4 = arith.constant 0 : index
    %3 = vector.load %arg3[%c0_3, %c0_4] : memref<256x8xf32, #tpu.memory_space<vmem>>, vector<256x8xf32>
    tpu.vector_store %arg3[%c0_3, %c0_4], %2 {strides = array<i32>} : memref<256x8xf32, #tpu.memory_space<vmem>>, vector<256x8xf32>,
    return
  }
  func.func @transform_0(%arg0: i32) -> (i32, i32) {
    %c0_i32 = arith.constant 0 : i32
    %c0_i32_0 = arith.constant 0 : i32
    return %arg0, %c0_i32 : i32, i32
  }
  func.func @transform_1(%arg0: i32) -> (i32, i32) {
    %c0_i32 = arith.constant 0 : i32
    %c0_i32_0 = arith.constant 0 : i32
    %c0_i32_1 = arith.constant 0 : i32
    return %c0_i32, %c0_i32_0 : i32, i32
  }
  func.func @transform_2(%arg0: i32) -> (i32, i32) {
    %c0_i32 = arith.constant 0 : i32
    %c0_i32_0 = arith.constant 0 : i32
    return %arg0, %c0_i32 : i32, i32
  }
}

module attributes {stable_mosaic.version = 11 : i64} {
  func.func @_gemm_act_kernel(%arg0: i32, %arg1: memref<64x128xbf16, #tpu.memory_space<vmem>>, %arg2: memref<128x8xbf16, #tpu.memory_space<vmem>>, %arg3: memref<64x8xf32, #tpu.memory_space<vmem>>) attributes {dimension_semantics = [#tpu.dimension_semantics<parallel>], iteration_bounds = array<i64: 2>, scalar_prefetch = 0 : i64, scratch_operands = 0 : i64, tpu.core_type = #tpu.core_type<tc>, window_params = [{transform_indices = @transform_0, window_bounds = array<i64: 64, 128>}, {pipeline_mode = #tpu.pipeline_mode<synchronous>, transform_indices = @transform_1, window_bounds = array<i64: 128, 8>}, {transform_indices = @transform_2, window_bounds = array<i64: 64, 8>}]} {
    %c0 = arith.constant 0 : index
    %c0_0 = arith.constant 0 : index
    %0 = vector.load %arg1[%c0, %c0_0] : memref<64x128xbf16, #tpu.memory_space<vmem>>, vector<64x128xbf16>
    %c0_1 = arith.constant 0 : index
    %c0_2 = arith.constant 0 : index
    %1 = vector.load %arg2[%c0_1, %c0_2] : memref<128x8xbf16, #tpu.memory_space<vmem>>, vector<128x8xbf16>
    %cst = arith.constant dense<0.000000e+00> : vector<64x8xf32>
    %2 = tpu.matmul %0, %1, %cst {dimension_numbers = #tpu.dot_dimension_numbers<[1], [0], [0], [1], [0, 0, 1, 1], [], []>} : vector<64x128xbf16>, vector<128x8xbf16>, vector<64x8xf32> -> vector<64x8xf32>
    %c0_3 = arith.constant 0 : index
    %c0_4 = arith.constant 0 : index
    %3 = vector.load %arg3[%c0_3, %c0_4] : memref<64x8xf32, #tpu.memory_space<vmem>>, vector<64x8xf32>
    tpu.vector_store %arg3[%c0_3, %c0_4], %2 {strides = array<i32>} : memref<64x8xf32, #tpu.memory_space<vmem>>, vector<64x8xf32>,
    return
  }
  func.func @transform_0(%arg0: i32) -> (i32, i32) {
    %c0_i32 = arith.constant 0 : i32
    %c0_i32_0 = arith.constant 0 : i32
    return %arg0, %c0_i32 : i32, i32
  }
  func.func @transform_1(%arg0: i32) -> (i32, i32) {
    %c0_i32 = arith.constant 0 : i32
    %c0_i32_0 = arith.constant 0 : i32
    %c0_i32_1 = arith.constant 0 : i32
    return %c0_i32, %c0_i32_0 : i32, i32
  }
  func.func @transform_2(%arg0: i32) -> (i32, i32) {
    %c0_i32 = arith.constant 0 : i32
    %c0_i32_0 = arith.constant 0 : i32
    return %arg0, %c0_i32 : i32, i32
  }
}

module attributes {stable_mosaic.version = 11 : i64} {
  func.func @_gemm_act_kernel(%arg0: i32, %arg1: memref<16x128xbf16, #tpu.memory_space<vmem>>, %arg2: memref<128x8xbf16, #tpu.memory_space<vmem>>, %arg3: memref<16x8xf32, #tpu.memory_space<vmem>>) attributes {dimension_semantics = [#tpu.dimension_semantics<parallel>], iteration_bounds = array<i64: 2>, scalar_prefetch = 0 : i64, scratch_operands = 0 : i64, tpu.core_type = #tpu.core_type<tc>, window_params = [{transform_indices = @transform_0, window_bounds = array<i64: 16, 128>}, {pipeline_mode = #tpu.pipeline_mode<synchronous>, transform_indices = @transform_1, window_bounds = array<i64: 128, 8>}, {transform_indices = @transform_2, window_bounds = array<i64: 16, 8>}]} {
    %c0 = arith.constant 0 : index
    %c0_0 = arith.constant 0 : index
    %0 = vector.load %arg1[%c0, %c0_0] : memref<16x128xbf16, #tpu.memory_space<vmem>>, vector<16x128xbf16>
    %c0_1 = arith.constant 0 : index
    %c0_2 = arith.constant 0 : index
    %1 = vector.load %arg2[%c0_1, %c0_2] : memref<128x8xbf16, #tpu.memory_space<vmem>>, vector<128x8xbf16>
    %cst = arith.constant dense<0.000000e+00> : vector<16x8xf32>
    %2 = tpu.matmul %0, %1, %cst {dimension_numbers = #tpu.dot_dimension_numbers<[1], [0], [0], [1], [0, 0, 1, 1], [], []>} : vector<16x128xbf16>, vector<128x8xbf16>, vector<16x8xf32> -> vector<16x8xf32>
    %c0_3 = arith.constant 0 : index
    %c0_4 = arith.constant 0 : index
    %3 = vector.load %arg3[%c0_3, %c0_4] : memref<16x8xf32, #tpu.memory_space<vmem>>, vector<16x8xf32>
    tpu.vector_store %arg3[%c0_3, %c0_4], %2 {strides = array<i32>} : memref<16x8xf32, #tpu.memory_space<vmem>>, vector<16x8xf32>,
    return
  }
  func.func @transform_0(%arg0: i32) -> (i32, i32) {
    %c0_i32 = arith.constant 0 : i32
    %c0_i32_0 = arith.constant 0 : i32
    return %arg0, %c0_i32 : i32, i32
  }
  func.func @transform_1(%arg0: i32) -> (i32, i32) {
    %c0_i32 = arith.constant 0 : i32
    %c0_i32_0 = arith.constant 0 : i32
    %c0_i32_1 = arith.constant 0 : i32
    return %c0_i32, %c0_i32_0 : i32, i32
  }
  func.func @transform_2(%arg0: i32) -> (i32, i32) {
    %c0_i32 = arith.constant 0 : i32
    %c0_i32_0 = arith.constant 0 : i32
    return %arg0, %c0_i32 : i32, i32
  }
}

module attributes {stable_mosaic.version = 11 : i64} {
  func.func @_gemm_act_kernel(%arg0: i32, %arg1: memref<8x128xbf16, #tpu.memory_space<vmem>>, %arg2: memref<128x16xbf16, #tpu.memory_space<vmem>>, %arg3: memref<8x16xf32, #tpu.memory_space<vmem>>) attributes {dimension_semantics = [#tpu.dimension_semantics<parallel>], iteration_bounds = array<i64: 1>, scalar_prefetch = 0 : i64, scratch_operands = 0 : i64, tpu.core_type = #tpu.core_type<tc>, window_params = [{transform_indices = @transform_0, window_bounds = array<i64: 8, 128>}, {pipeline_mode = #tpu.pipeline_mode<synchronous>, transform_indices = @transform_1, window_bounds = array<i64: 128, 16>}, {transform_indices = @transform_2, window_bounds = array<i64: 8, 16>}]} {
    %c0 = arith.constant 0 : index
    %c0_0 = arith.constant 0 : index
    %0 = vector.load %arg1[%c0, %c0_0] : memref<8x128xbf16, #tpu.memory_space<vmem>>, vector<8x128xbf16>
    %c0_1 = arith.constant 0 : index
    %c0_2 = arith.constant 0 : index
    %1 = vector.load %arg2[%c0_1, %c0_2] : memref<128x16xbf16, #tpu.memory_space<vmem>>, vector<128x16xbf16>
    %cst = arith.constant dense<0.000000e+00> : vector<8x16xf32>
    %2 = tpu.matmul %0, %1, %cst {dimension_numbers = #tpu.dot_dimension_numbers<[1], [0], [0], [1], [0, 0, 1, 1], [], []>} : vector<8x128xbf16>, vector<128x16xbf16>, vector<8x16xf32> -> vector<8x16xf32>
    %c0_3 = arith.constant 0 : index
    %c0_4 = arith.constant 0 : index
    %3 = vector.load %arg3[%c0_3, %c0_4] : memref<8x16xf32, #tpu.memory_space<vmem>>, vector<8x16xf32>
    tpu.vector_store %arg3[%c0_3, %c0_4], %2 {strides = array<i32>} : memref<8x16xf32, #tpu.memory_space<vmem>>, vector<8x16xf32>,
    return
  }
  func.func @transform_0(%arg0: i32) -> (i32, i32) {
    %c0_i32 = arith.constant 0 : i32
    %c0_i32_0 = arith.constant 0 : i32
    return %arg0, %c0_i32 : i32, i32
  }
  func.func @transform_1(%arg0: i32) -> (i32, i32) {
    %c0_i32 = arith.constant 0 : i32
    %c0_i32_0 = arith.constant 0 : i32
    %c0_i32_1 = arith.constant 0 : i32
    return %c0_i32, %c0_i32_0 : i32, i32
  }
  func.func @transform_2(%arg0: i32) -> (i32, i32) {
    %c0_i32 = arith.constant 0 : i32
    %c0_i32_0 = arith.constant 0 : i32
    return %arg0, %c0_i32 : i32, i32
  }
}

module attributes {stable_mosaic.version = 11 : i64} {
  func.func @_gemm_act_kernel(%arg0: i32, %arg1: memref<8x256xbf16, #tpu.memory_space<vmem>>, %arg2: memref<256x16xbf16, #tpu.memory_space<vmem>>, %arg3: memref<8x16xf32, #tpu.memory_space<vmem>>) attributes {dimension_semantics = [#tpu.dimension_semantics<parallel>], iteration_bounds = array<i64: 1>, scalar_prefetch = 0 : i64, scratch_operands = 0 : i64, tpu.core_type = #tpu.core_type<tc>, window_params = [{transform_indices = @transform_0, window_bounds = array<i64: 8, 256>}, {pipeline_mode = #tpu.pipeline_mode<synchronous>, transform_indices = @transform_1, window_bounds = array<i64: 256, 16>}, {transform_indices = @transform_2, window_bounds = array<i64: 8, 16>}]} {
    %c0 = arith.constant 0 : index
    %c0_0 = arith.constant 0 : index
    %0 = vector.load %arg1[%c0, %c0_0] : memref<8x256xbf16, #tpu.memory_space<vmem>>, vector<8x256xbf16>
    %c0_1 = arith.constant 0 : index
    %c0_2 = arith.constant 0 : index
    %1 = vector.load %arg2[%c0_1, %c0_2] : memref<256x16xbf16, #tpu.memory_space<vmem>>, vector<256x16xbf16>
    %cst = arith.constant dense<0.000000e+00> : vector<8x16xf32>
    %2 = tpu.matmul %0, %1, %cst {dimension_numbers = #tpu.dot_dimension_numbers<[1], [0], [0], [1], [0, 0, 1, 1], [], []>} : vector<8x256xbf16>, vector<256x16xbf16>, vector<8x16xf32> -> vector<8x16xf32>
    %c0_3 = arith.constant 0 : index
    %c0_4 = arith.constant 0 : index
    %3 = vector.load %arg3[%c0_3, %c0_4] : memref<8x16xf32, #tpu.memory_space<vmem>>, vector<8x16xf32>
    tpu.vector_store %arg3[%c0_3, %c0_4], %2 {strides = array<i32>} : memref<8x16xf32, #tpu.memory_space<vmem>>, vector<8x16xf32>,
    return
  }
  func.func @transform_0(%arg0: i32) -> (i32, i32) {
    %c0_i32 = arith.constant 0 : i32
    %c0_i32_0 = arith.constant 0 : i32
    return %arg0, %c0_i32 : i32, i32
  }
  func.func @transform_1(%arg0: i32) -> (i32, i32) {
    %c0_i32 = arith.constant 0 : i32
    %c0_i32_0 = arith.constant 0 : i32
    %c0_i32_1 = arith.constant 0 : i32
    return %c0_i32, %c0_i32_0 : i32, i32
  }
  func.func @transform_2(%arg0: i32) -> (i32, i32) {
    %c0_i32 = arith.constant 0 : i32
    %c0_i32_0 = arith.constant 0 : i32
    return %arg0, %c0_i32 : i32, i32
  }
}

module attributes {stable_mosaic.version = 11 : i64} {
  func.func @_gemm_act_kernel(%arg0: i32, %arg1: memref<8x256xbf16, #tpu.memory_space<vmem>>, %arg2: memref<256x64xbf16, #tpu.memory_space<vmem>>, %arg3: memref<8x64xf32, #tpu.memory_space<vmem>>) attributes {dimension_semantics = [#tpu.dimension_semantics<parallel>], iteration_bounds = array<i64: 1>, scalar_prefetch = 0 : i64, scratch_operands = 0 : i64, tpu.core_type = #tpu.core_type<tc>, window_params = [{transform_indices = @transform_0, window_bounds = array<i64: 8, 256>}, {pipeline_mode = #tpu.pipeline_mode<synchronous>, transform_indices = @transform_1, window_bounds = array<i64: 256, 64>}, {transform_indices = @transform_2, window_bounds = array<i64: 8, 64>}]} {
    %c0 = arith.constant 0 : index
    %c0_0 = arith.constant 0 : index
    %0 = vector.load %arg1[%c0, %c0_0] : memref<8x256xbf16, #tpu.memory_space<vmem>>, vector<8x256xbf16>
    %c0_1 = arith.constant 0 : index
    %c0_2 = arith.constant 0 : index
    %1 = vector.load %arg2[%c0_1, %c0_2] : memref<256x64xbf16, #tpu.memory_space<vmem>>, vector<256x64xbf16>
    %cst = arith.constant dense<0.000000e+00> : vector<8x64xf32>
    %2 = tpu.matmul %0, %1, %cst {dimension_numbers = #tpu.dot_dimension_numbers<[1], [0], [0], [1], [0, 0, 1, 1], [], []>} : vector<8x256xbf16>, vector<256x64xbf16>, vector<8x64xf32> -> vector<8x64xf32>
    %c0_3 = arith.constant 0 : index
    %c0_4 = arith.constant 0 : index
    %3 = vector.load %arg3[%c0_3, %c0_4] : memref<8x64xf32, #tpu.memory_space<vmem>>, vector<8x64xf32>
    tpu.vector_store %arg3[%c0_3, %c0_4], %2 {strides = array<i32>} : memref<8x64xf32, #tpu.memory_space<vmem>>, vector<8x64xf32>,
    return
  }
  func.func @transform_0(%arg0: i32) -> (i32, i32) {
    %c0_i32 = arith.constant 0 : i32
    %c0_i32_0 = arith.constant 0 : i32
    return %arg0, %c0_i32 : i32, i32
  }
  func.func @transform_1(%arg0: i32) -> (i32, i32) {
    %c0_i32 = arith.constant 0 : i32
    %c0_i32_0 = arith.constant 0 : i32
    %c0_i32_1 = arith.constant 0 : i32
    return %c0_i32, %c0_i32_0 : i32, i32
  }
  func.func @transform_2(%arg0: i32) -> (i32, i32) {
    %c0_i32 = arith.constant 0 : i32
    %c0_i32_0 = arith.constant 0 : i32
    return %arg0, %c0_i32 : i32, i32
  }
}

module attributes {stable_mosaic.version = 11 : i64} {
  func.func @_gemm_act_kernel(%arg0: i32, %arg1: memref<8x384xbf16, #tpu.memory_space<vmem>>, %arg2: memref<384x32xbf16, #tpu.memory_space<vmem>>, %arg3: memref<8x32xf32, #tpu.memory_space<vmem>>) attributes {dimension_semantics = [#tpu.dimension_semantics<parallel>], iteration_bounds = array<i64: 1>, scalar_prefetch = 0 : i64, scratch_operands = 0 : i64, tpu.core_type = #tpu.core_type<tc>, window_params = [{transform_indices = @transform_0, window_bounds = array<i64: 8, 384>}, {pipeline_mode = #tpu.pipeline_mode<synchronous>, transform_indices = @transform_1, window_bounds = array<i64: 384, 32>}, {transform_indices = @transform_2, window_bounds = array<i64: 8, 32>}]} {
    %c0 = arith.constant 0 : index
    %c0_0 = arith.constant 0 : index
    %0 = vector.load %arg1[%c0, %c0_0] : memref<8x384xbf16, #tpu.memory_space<vmem>>, vector<8x384xbf16>
    %c0_1 = arith.constant 0 : index
    %c0_2 = arith.constant 0 : index
    %1 = vector.load %arg2[%c0_1, %c0_2] : memref<384x32xbf16, #tpu.memory_space<vmem>>, vector<384x32xbf16>
    %cst = arith.constant dense<0.000000e+00> : vector<8x32xf32>
    %2 = tpu.matmul %0, %1, %cst {dimension_numbers = #tpu.dot_dimension_numbers<[1], [0], [0], [1], [0, 0, 1, 1], [], []>} : vector<8x384xbf16>, vector<384x32xbf16>, vector<8x32xf32> -> vector<8x32xf32>
    %c0_3 = arith.constant 0 : index
    %c0_4 = arith.constant 0 : index
    %3 = vector.load %arg3[%c0_3, %c0_4] : memref<8x32xf32, #tpu.memory_space<vmem>>, vector<8x32xf32>
    tpu.vector_store %arg3[%c0_3, %c0_4], %2 {strides = array<i32>} : memref<8x32xf32, #tpu.memory_space<vmem>>, vector<8x32xf32>,
    return
  }
  func.func @transform_0(%arg0: i32) -> (i32, i32) {
    %c0_i32 = arith.constant 0 : i32
    %c0_i32_0 = arith.constant 0 : i32
    return %arg0, %c0_i32 : i32, i32
  }
  func.func @transform_1(%arg0: i32) -> (i32, i32) {
    %c0_i32 = arith.constant 0 : i32
    %c0_i32_0 = arith.constant 0 : i32
    %c0_i32_1 = arith.constant 0 : i32
    return %c0_i32, %c0_i32_0 : i32, i32
  }
  func.func @transform_2(%arg0: i32) -> (i32, i32) {
    %c0_i32 = arith.constant 0 : i32
    %c0_i32_0 = arith.constant 0 : i32
    return %arg0, %c0_i32 : i32, i32
  }
}

module attributes {stable_mosaic.version = 11 : i64} {
  func.func @_gemm_act_kernel(%arg0: i32, %arg1: memref<16x256xbf16, #tpu.memory_space<vmem>>, %arg2: memref<256x16xbf16, #tpu.memory_space<vmem>>, %arg3: memref<16x16xf32, #tpu.memory_space<vmem>>) attributes {dimension_semantics = [#tpu.dimension_semantics<parallel>], iteration_bounds = array<i64: 2>, scalar_prefetch = 0 : i64, scratch_operands = 0 : i64, tpu.core_type = #tpu.core_type<tc>, window_params = [{transform_indices = @transform_0, window_bounds = array<i64: 16, 256>}, {pipeline_mode = #tpu.pipeline_mode<synchronous>, transform_indices = @transform_1, window_bounds = array<i64: 256, 16>}, {transform_indices = @transform_2, window_bounds = array<i64: 16, 16>}]} {
    %c0 = arith.constant 0 : index
    %c0_0 = arith.constant 0 : index
    %0 = vector.load %arg1[%c0, %c0_0] : memref<16x256xbf16, #tpu.memory_space<vmem>>, vector<16x256xbf16>
    %c0_1 = arith.constant 0 : index
    %c0_2 = arith.constant 0 : index
    %1 = vector.load %arg2[%c0_1, %c0_2] : memref<256x16xbf16, #tpu.memory_space<vmem>>, vector<256x16xbf16>
    %cst = arith.constant dense<0.000000e+00> : vector<16x16xf32>
    %2 = tpu.matmul %0, %1, %cst {dimension_numbers = #tpu.dot_dimension_numbers<[1], [0], [0], [1], [0, 0, 1, 1], [], []>} : vector<16x256xbf16>, vector<256x16xbf16>, vector<16x16xf32> -> vector<16x16xf32>
    %c0_3 = arith.constant 0 : index
    %c0_4 = arith.constant 0 : index
    %3 = vector.load %arg3[%c0_3, %c0_4] : memref<16x16xf32, #tpu.memory_space<vmem>>, vector<16x16xf32>
    tpu.vector_store %arg3[%c0_3, %c0_4], %2 {strides = array<i32>} : memref<16x16xf32, #tpu.memory_space<vmem>>, vector<16x16xf32>,
    return
  }
  func.func @transform_0(%arg0: i32) -> (i32, i32) {
    %c0_i32 = arith.constant 0 : i32
    %c0_i32_0 = arith.constant 0 : i32
    return %arg0, %c0_i32 : i32, i32
  }
  func.func @transform_1(%arg0: i32) -> (i32, i32) {
    %c0_i32 = arith.constant 0 : i32
    %c0_i32_0 = arith.constant 0 : i32
    %c0_i32_1 = arith.constant 0 : i32
    return %c0_i32, %c0_i32_0 : i32, i32
  }
  func.func @transform_2(%arg0: i32) -> (i32, i32) {
    %c0_i32 = arith.constant 0 : i32
    %c0_i32_0 = arith.constant 0 : i32
    return %arg0, %c0_i32 : i32, i32
  }
}

module attributes {stable_mosaic.version = 11 : i64} {
  func.func @_gemm_act_kernel(%arg0: i32, %arg1: memref<64x128xbf16, #tpu.memory_space<vmem>>, %arg2: memref<128x8xbf16, #tpu.memory_space<vmem>>, %arg3: memref<64x8xf32, #tpu.memory_space<vmem>>) attributes {dimension_semantics = [#tpu.dimension_semantics<parallel>], iteration_bounds = array<i64: 2>, scalar_prefetch = 0 : i64, scratch_operands = 0 : i64, tpu.core_type = #tpu.core_type<tc>, window_params = [{transform_indices = @transform_0, window_bounds = array<i64: 64, 128>}, {pipeline_mode = #tpu.pipeline_mode<synchronous>, transform_indices = @transform_1, window_bounds = array<i64: 128, 8>}, {transform_indices = @transform_2, window_bounds = array<i64: 64, 8>}]} {
    %c0 = arith.constant 0 : index
    %c0_0 = arith.constant 0 : index
    %0 = vector.load %arg1[%c0, %c0_0] : memref<64x128xbf16, #tpu.memory_space<vmem>>, vector<64x128xbf16>
    %c0_1 = arith.constant 0 : index
    %c0_2 = arith.constant 0 : index
    %1 = vector.load %arg2[%c0_1, %c0_2] : memref<128x8xbf16, #tpu.memory_space<vmem>>, vector<128x8xbf16>
    %cst = arith.constant dense<0.000000e+00> : vector<64x8xf32>
    %2 = tpu.matmul %0, %1, %cst {dimension_numbers = #tpu.dot_dimension_numbers<[1], [0], [0], [1], [0, 0, 1, 1], [], []>} : vector<64x128xbf16>, vector<128x8xbf16>, vector<64x8xf32> -> vector<64x8xf32>
    %c0_3 = arith.constant 0 : index
    %c0_4 = arith.constant 0 : index
    %3 = vector.load %arg3[%c0_3, %c0_4] : memref<64x8xf32, #tpu.memory_space<vmem>>, vector<64x8xf32>
    tpu.vector_store %arg3[%c0_3, %c0_4], %2 {strides = array<i32>} : memref<64x8xf32, #tpu.memory_space<vmem>>, vector<64x8xf32>,
    return
  }
  func.func @transform_0(%arg0: i32) -> (i32, i32) {
    %c0_i32 = arith.constant 0 : i32
    %c0_i32_0 = arith.constant 0 : i32
    return %arg0, %c0_i32 : i32, i32
  }
  func.func @transform_1(%arg0: i32) -> (i32, i32) {
    %c0_i32 = arith.constant 0 : i32
    %c0_i32_0 = arith.constant 0 : i32
    %c0_i32_1 = arith.constant 0 : i32
    return %c0_i32, %c0_i32_0 : i32, i32
  }
  func.func @transform_2(%arg0: i32) -> (i32, i32) {
    %c0_i32 = arith.constant 0 : i32
    %c0_i32_0 = arith.constant 0 : i32
    return %arg0, %c0_i32 : i32, i32
  }
}

module attributes {stable_mosaic.version = 11 : i64} {
  func.func @_gemm_act_kernel(%arg0: i32, %arg1: memref<256x128xbf16, #tpu.memory_space<vmem>>, %arg2: memref<128x8xbf16, #tpu.memory_space<vmem>>, %arg3: memref<256x8xf32, #tpu.memory_space<vmem>>) attributes {dimension_semantics = [#tpu.dimension_semantics<parallel>], iteration_bounds = array<i64: 2>, scalar_prefetch = 0 : i64, scratch_operands = 0 : i64, tpu.core_type = #tpu.core_type<tc>, window_params = [{transform_indices = @transform_0, window_bounds = array<i64: 256, 128>}, {pipeline_mode = #tpu.pipeline_mode<synchronous>, transform_indices = @transform_1, window_bounds = array<i64: 128, 8>}, {transform_indices = @transform_2, window_bounds = array<i64: 256, 8>}]} {
    %c0 = arith.constant 0 : index
    %c0_0 = arith.constant 0 : index
    %0 = vector.load %arg1[%c0, %c0_0] : memref<256x128xbf16, #tpu.memory_space<vmem>>, vector<256x128xbf16>
    %c0_1 = arith.constant 0 : index
    %c0_2 = arith.constant 0 : index
    %1 = vector.load %arg2[%c0_1, %c0_2] : memref<128x8xbf16, #tpu.memory_space<vmem>>, vector<128x8xbf16>
    %cst = arith.constant dense<0.000000e+00> : vector<256x8xf32>
    %2 = tpu.matmul %0, %1, %cst {dimension_numbers = #tpu.dot_dimension_numbers<[1], [0], [0], [1], [0, 0, 1, 1], [], []>} : vector<256x128xbf16>, vector<128x8xbf16>, vector<256x8xf32> -> vector<256x8xf32>
    %3 = math.tanh %2 : vector<256x8xf32>
    %c0_3 = arith.constant 0 : index
    %c0_4 = arith.constant 0 : index
    %4 = vector.load %arg3[%c0_3, %c0_4] : memref<256x8xf32, #tpu.memory_space<vmem>>, vector<256x8xf32>
    tpu.vector_store %arg3[%c0_3, %c0_4], %3 {strides = array<i32>} : memref<256x8xf32, #tpu.memory_space<vmem>>, vector<256x8xf32>,
    return
  }
  func.func @transform_0(%arg0: i32) -> (i32, i32) {
    %c0_i32 = arith.constant 0 : i32
    %c0_i32_0 = arith.constant 0 : i32
    return %arg0, %c0_i32 : i32, i32
  }
  func.func @transform_1(%arg0: i32) -> (i32, i32) {
    %c0_i32 = arith.constant 0 : i32
    %c0_i32_0 = arith.constant 0 : i32
    %c0_i32_1 = arith.constant 0 : i32
    return %c0_i32, %c0_i32_0 : i32, i32
  }
  func.func @transform_2(%arg0: i32) -> (i32, i32) {
    %c0_i32 = arith.constant 0 : i32
    %c0_i32_0 = arith.constant 0 : i32
    return %arg0, %c0_i32 : i32, i32
  }
}

</mosaic_0001>

<bundles_post_ra>
// kernel: unet_forward.10
= control target key start
LH: loop header
LB: loop body
LE: loop exit
PB: predicated region body
PF: predicated region fallthrough
CT: control target
= control target key end

     0   :  { %s768_s9 = smov 0   ;;  %s897_s0 = inlined_call_operand.vmem [shape: bf16[512,128], index: 0, kind: input, shape index: {}]   ;;  %s898_s1 = inlined_call_operand.vmem [shape: bf16[128,8], index: 1, kind: input, shape index: {}]   ;;  %s899_s2 = inlined_call_operand.vmem [shape: f32[512,8], index: 2, kind: output, shape index: {}]  }
   0x1 LB: > { %s590_s10 = sadd.s32 4294967295, %s751_s9   ;;  %p594_p0 = scmp.ge.s32.totalorder %s751_s9, 1  ;;  %s751_s9 = sphi %s768_s9, %s12_s9  }
   0x2   : > { %p113_p1 = scmp.lt.s32.totalorder %s751_s9, 3 }
   0x4   : > { %p114_p2 = pnand %p594_p0, %p113_p1 }
   0x5   : > { %v721_v0 = vld [vmem:[%s898_s1] sm:$0xff] (!%p114_p2)   ;;  %s595_s13 = sshll.u32 (!%p114_p2), %s590_s10, 5  ;;  %v722_v1 = vld [vmem:[%s898_s1 + $0x8] sm:$0xff] (!%p114_p2)   ;;  %v723_v2 = vld [vmem:[%s898_s1 + $0x10] sm:$0xff] (!%p114_p2)   ;;  %vm501_vm0 = vcmask (!%p114_p2), 64512  }
   0x6   : > { %117 = sbr.rel (%p114_p2) target bundleno = 278 (0x116), region = 28  ;;  %p136_p3 = scmp.lt.s32.totalorder (!%p114_p2), %s595_s13, 63  ;;  %649 = vmatprep.subr.bf16.mxu0 (!%p114_p2), %v721_v0  ;;  %697 = vmatprep.subr.bf16.mxu1 (!%p114_p2), %v721_v0  ;;  %v724_v3 = vld [vmem:[%s898_s1 + $0x18] sm:$0xff] (!%p114_p2)   ;;  %v725_v6 = vld [vmem:[%s898_s1 + $0x20] sm:$0xff] (!%p114_p2)   ;;  %v726_v7 = vld [vmem:[%s898_s1 + $0x28] sm:$0xff] (!%p114_p2)  }
   0x7   : > { %650 = vmatpush3.bf16.msra.mxu0 (!%p114_p2), %v721_v0  ;;  %705 = vmatpush3.bf16.msra.mxu1 (!%p114_p2), %v721_v0  ;;  %v727_v8 = vld [vmem:[%s898_s1 + $0x30] sm:$0xff] (!%p114_p2)   ;;  %v728_v9 = vld [vmem:[%s898_s1 + $0x38] sm:$0xff] (!%p114_p2)  }
   0x8   : > { %651 = vmatprep.subr.bf16.mxu0 (!%p114_p2), %v722_v1  ;;  %698 = vmatprep.subr.bf16.mxu1 (!%p114_p2), %v722_v1 }
   0xb   : > { %652 = vmatpush3.bf16.msra.mxu0 (!%p114_p2), %v722_v1  ;;  %706 = vmatpush3.bf16.msra.mxu1 (!%p114_p2), %v722_v1 }
   0xc   : > { %653 = vmatprep.subr.bf16.mxu0 (!%p114_p2), %v723_v2  ;;  %699 = vmatprep.subr.bf16.mxu1 (!%p114_p2), %v723_v2 }
   0xd   : > { %s901_s13 = smov (!%p136_p3, %s595_s13), 63 }
   0xe   : > { %s596_s18 = sshll.u32 %s901_s13, 2  ;;  %s598_s4 = sshll.u32 %s901_s13, 3 }
   0xf   : > { %s791_s21 = scalar_lea.vmem %s897_s0, %s596_s18  ;;  %654 = vmatpush3.bf16.msra.mxu0 %v723_v2  ;;  %707 = vmatpush3.bf16.msra.mxu1 %v723_v2  ;;  %s828_s7 = scalar_lea.vmem %s899_s2, %s598_s4 }
  0x10   : > { %v729_v4 = vld [vmem:[%s791_s21] sm:$0xff]   ;;  %655 = vmatprep.subr.bf16.mxu0 %v724_v3  ;;  %700 = vmatprep.subr.bf16.mxu1 %v724_v3  ;;  %v731_v10 = vld [vmem:[%s791_s21 + $0x8] sm:$0xff]   ;;  %v733_v12 = vld [vmem:[%s791_s21 + $0x10] sm:$0xff]  }
  0x11   : > { %v730_v5 = vld [vmem:[%s791_s21 + $0x40] sm:$0xff]   ;;  %665 = vmatprep.mubr.bf16.mxu0 %v729_v4  ;;  %v732_v11 = vld [vmem:[%s791_s21 + $0x48] sm:$0xff]   ;;  %v734_v13 = vld [vmem:[%s791_s21 + $0x50] sm:$0xff]  }
  0x12   : > { %681 = vmatprep.mubr.bf16.mxu1 %v730_v5  ;;  %v735_v14 = vld [vmem:[%s791_s21 + $0x18] sm:$0xff]   ;;  %v737_v16 = vld [vmem:[%s791_s21 + $0x20] sm:$0xff]   ;;  %v739_v18 = vld [vmem:[%s791_s21 + $0x28] sm:$0xff]  }
  0x13   : > { %656 = vmatpush3.bf16.msra.mxu0 %v724_v3  ;;  %708 = vmatpush3.bf16.msra.mxu1 %v724_v3  ;;  %v736_v15 = vld [vmem:[%s791_s21 + $0x58] sm:$0xff]   ;;  %v738_v17 = vld [vmem:[%s791_s21 + $0x60] sm:$0xff]   ;;  %v740_v19 = vld [vmem:[%s791_s21 + $0x68] sm:$0xff]  }
  0x14   : > { %657 = vmatprep.subr.bf16.mxu0 %v725_v6  ;;  %701 = vmatprep.subr.bf16.mxu1 %v725_v6  ;;  %v741_v20 = vld [vmem:[%s791_s21 + $0x30] sm:$0xff]   ;;  %v743_v22 = vld [vmem:[%s791_s21 + $0x38] sm:$0xff]  }
  0x15   : > { %v742_v21 = vld [vmem:[%s791_s21 + $0x70] sm:$0xff]   ;;  %v744_v23 = vld [vmem:[%s791_s21 + $0x78] sm:$0xff]  }
  0x17   : > { %658 = vmatpush3.bf16.msra.mxu0 %v725_v6  ;;  %709 = vmatpush3.bf16.msra.mxu1 %v725_v6 }
  0x18   : > { %659 = vmatprep.subr.bf16.mxu0 %v726_v7  ;;  %702 = vmatprep.subr.bf16.mxu1 %v726_v7 }
  0x1b   : > { %660 = vmatpush3.bf16.msra.mxu0 %v726_v7  ;;  %710 = vmatpush3.bf16.msra.mxu1 %v726_v7 }
  0x1c   : > { %661 = vmatprep.subr.bf16.mxu0 %v727_v8  ;;  %703 = vmatprep.subr.bf16.mxu1 %v727_v8 }
  0x1f   : > { %662 = vmatpush3.bf16.msra.mxu0 %v727_v8  ;;  %711 = vmatpush3.bf16.msra.mxu1 %v727_v8 }
  0x20   : > { %663 = vmatprep.subr.bf16.mxu0 %v728_v9  ;;  %704 = vmatprep.subr.bf16.mxu1 %v728_v9 }
  0x23   : > { %664 = vmatpush3.bf16.msra.mxu0 %v728_v9  ;;  %712 = vmatpush3.bf16.msra.mxu1 %v728_v9 }
  0x26   : > { %666 = vmatmul.mubr.bf16.vlgmr.msra.gmra.mrb[0].mxu0 %v731_v10  ;;  %682 = vmatmul.mubr.bf16.vlgmr.msra.gmra.mrb[0].mxu1 %v732_v11 }
  0x27   : > { %669 = vmatprep.mubr.bf16.mxu0 %v733_v12  ;;  %685 = vmatprep.mubr.bf16.mxu1 %v734_v13 }
  0x2e   : > { %670 = vmatmul.mubr.bf16.gmra.mrb[4].mxu0 %v735_v14  ;;  %686 = vmatmul.mubr.bf16.gmra.mrb[4].mxu1 %v736_v15 }
  0x2f   : > { %673 = vmatprep.mubr.bf16.mxu0 %v737_v16  ;;  %689 = vmatprep.mubr.bf16.mxu1 %v738_v17 }
  0x36   : > { %674 = vmatmul.mubr.bf16.gmra.mrb[8].mxu0 %v739_v18  ;;  %690 = vmatmul.mubr.bf16.gmra.mrb[8].mxu1 %v740_v19 }
  0x37   : > { %677 = vmatprep.mubr.bf16.mxu0 %v741_v20  ;;  %693 = vmatprep.mubr.bf16.mxu1 %v742_v21 }
  0x3e   : > { %678 = vmatmul.mubr.bf16.gmra.mrb[12].mxu0 %v743_v22  ;;  %694 = vmatmul.mubr.bf16.gmra.mrb[12].mxu1 %v744_v23 }
  0xf9   : > { %v667_v24 = vpop.f32.mrb[0].mxu0  ;;  %v683_v25 = vpop.f32.mrb[0].mxu1 }
  0xfa   : > { %504 = vst.msk [vmem:[%s828_s7 + $0x10] sm:$0xff] %vm501_vm0, %v667_v24  ;;  %520 = vst.msk [vmem:[%s828_s7 + $0x90] sm:$0xff] %vm501_vm0, %v683_v25  ;;  %v374_v26 = vpop.f32.mrb[1].mxu0  ;;  %v438_v27 = vpop.f32.mrb[1].mxu1 }
  0xfb   : > { %502 = vst.msk [vmem:[%s828_s7] sm:$0xff] %vm501_vm0, %v374_v26  ;;  %518 = vst.msk [vmem:[%s828_s7 + $0x80] sm:$0xff] %vm501_vm0, %v438_v27  ;;  %v668_v28 = vpop.f32.mrb[2].mxu0  ;;  %v684_v29 = vpop.f32.mrb[2].mxu1 }
  0xfc   : > { %505 = vst.msk [vmem:[%s828_s7 + $0x18] sm:$0xff] %vm501_vm0, %v668_v28  ;;  %521 = vst.msk [vmem:[%s828_s7 + $0x98] sm:$0xff] %vm501_vm0, %v684_v29  ;;  %v377_v30 = vpop.f32.mrb[3].mxu0  ;;  %v441_v31 = vpop.f32.mrb[3].mxu1 }
  0xfd   : > { %503 = vst.msk [vmem:[%s828_s7 + $0x8] sm:$0xff] %vm501_vm0, %v377_v30  ;;  %519 = vst.msk [vmem:[%s828_s7 + $0x88] sm:$0xff] %vm501_vm0, %v441_v31 }
 0x101   : > { %v671_v32 = vpop.f32.mrb[4].mxu0  ;;  %v687_v33 = vpop.f32.mrb[4].mxu1 }
 0x102   : > { %508 = vst.msk [vmem:[%s828_s7 + $0x30] sm:$0xff] %vm501_vm0, %v671_v32  ;;  %524 = vst.msk [vmem:[%s828_s7 + $0xb0] sm:$0xff] %vm501_vm0, %v687_v33  ;;  %v390_v34 = vpop.f32.mrb[5].mxu0  ;;  %v454_v35 = vpop.f32.mrb[5].mxu1 }
 0x103   : > { %506 = vst.msk [vmem:[%s828_s7 + $0x20] sm:$0xff] %vm501_vm0, %v390_v34  ;;  %522 = vst.msk [vmem:[%s828_s7 + $0xa0] sm:$0xff] %vm501_vm0, %v454_v35  ;;  %v672_v36 = vpop.f32.mrb[6].mxu0  ;;  %v688_v37 = vpop.f32.mrb[6].mxu1 }
 0x104   : > { %509 = vst.msk [vmem:[%s828_s7 + $0x38] sm:$0xff] %vm501_vm0, %v672_v36  ;;  %525 = vst.msk [vmem:[%s828_s7 + $0xb8] sm:$0xff] %vm501_vm0, %v688_v37  ;;  %v393_v38 = vpop.f32.mrb[7].mxu0  ;;  %v457_v39 = vpop.f32.mrb[7].mxu1 }
 0x105   : > { %507 = vst.msk [vmem:[%s828_s7 + $0x28] sm:$0xff] %vm501_vm0, %v393_v38  ;;  %523 = vst.msk [vmem:[%s828_s7 + $0xa8] sm:$0xff] %vm501_vm0, %v457_v39 }
 0x109   : > { %v675_v40 = vpop.f32.mrb[8].mxu0  ;;  %v691_v41 = vpop.f32.mrb[8].mxu1 }
 0x10a   : > { %512 = vst.msk [vmem:[%s828_s7 + $0x50] sm:$0xff] %vm501_vm0, %v675_v40  ;;  %528 = vst.msk [vmem:[%s828_s7 + $0xd0] sm:$0xff] %vm501_vm0, %v691_v41  ;;  %v406_v42 = vpop.f32.mrb[9].mxu0  ;;  %v470_v43 = vpop.f32.mrb[9].mxu1 }
 0x10b   : > { %510 = vst.msk [vmem:[%s828_s7 + $0x40] sm:$0xff] %vm501_vm0, %v406_v42  ;;  %526 = vst.msk [vmem:[%s828_s7 + $0xc0] sm:$0xff] %vm501_vm0, %v470_v43  ;;  %v676_v44 = vpop.f32.mrb[10].mxu0  ;;  %v692_v45 = vpop.f32.mrb[10].mxu1 }
 0x10c   : > { %513 = vst.msk [vmem:[%s828_s7 + $0x58] sm:$0xff] %vm501_vm0, %v676_v44  ;;  %529 = vst.msk [vmem:[%s828_s7 + $0xd8] sm:$0xff] %vm501_vm0, %v692_v45  ;;  %v409_v46 = vpop.f32.mrb[11].mxu0  ;;  %v473_v47 = vpop.f32.mrb[11].mxu1 }
 0x10d   : > { %511 = vst.msk [vmem:[%s828_s7 + $0x48] sm:$0xff] %vm501_vm0, %v409_v46  ;;  %527 = vst.msk [vmem:[%s828_s7 + $0xc8] sm:$0xff] %vm501_vm0, %v473_v47 }
 0x111   : > { %v679_v48 = vpop.f32.mrb[12].mxu0  ;;  %v695_v49 = vpop.f32.mrb[12].mxu1 }
 0x112   : > { %516 = vst.msk [vmem:[%s828_s7 + $0x70] sm:$0xff] %vm501_vm0, %v679_v48  ;;  %532 = vst.msk [vmem:[%s828_s7 + $0xf0] sm:$0xff] %vm501_vm0, %v695_v49  ;;  %v422_v50 = vpop.f32.mrb[13].mxu0  ;;  %v486_v51 = vpop.f32.mrb[13].mxu1 }
 0x113   : > { %514 = vst.msk [vmem:[%s828_s7 + $0x60] sm:$0xff] %vm501_vm0, %v422_v50  ;;  %530 = vst.msk [vmem:[%s828_s7 + $0xe0] sm:$0xff] %vm501_vm0, %v486_v51  ;;  %v680_v52 = vpop.f32.mrb[14].mxu0  ;;  %v696_v53 = vpop.f32.mrb[14].mxu1 }
 0x114   : > { %517 = vst.msk [vmem:[%s828_s7 + $0x78] sm:$0xff] %vm501_vm0, %v680_v52  ;;  %533 = vst.msk [vmem:[%s828_s7 + $0xf8] sm:$0xff] %vm501_vm0, %v696_v53  ;;  %v425_v54 = vpop.f32.mrb[15].mxu0  ;;  %v489_v55 = vpop.f32.mrb[15].mxu1 }
 0x115   : > { %515 = vst.msk [vmem:[%s828_s7 + $0x68] sm:$0xff] %vm501_vm0, %v425_v54  ;;  %531 = vst.msk [vmem:[%s828_s7 + $0xe8] sm:$0xff] %vm501_vm0, %v489_v55 }
 0x116 PF: > { %s12_s9 = sadd.s32 1, %s751_s9  }
 0x117   : > { %p9_p4 = scmp.ge.s32.totalorder %s12_s9, 4  }
 0x119   :  { %11 = sbr.rel (!%p9_p4) target bundleno = 1 (0x1), region = 58 }

// kernel: unet_forward.11
= control target key start
LH: loop header
LB: loop body
LE: loop exit
PB: predicated region body
PF: predicated region fallthrough
CT: control target
= control target key end

     0   :  { %s492_s9 = smov 0   ;;  %s551_s0 = inlined_call_operand.vmem [shape: bf16[128,128], index: 0, kind: input, shape index: {}]   ;;  %s552_s1 = inlined_call_operand.vmem [shape: bf16[128,8], index: 1, kind: input, shape index: {}]   ;;  %s553_s2 = inlined_call_operand.vmem [shape: f32[128,8], index: 2, kind: output, shape index: {}]  }
   0x1 LB: > { %s374_s10 = sadd.s32 4294967295, %s475_s9   ;;  %p378_p0 = scmp.ge.s32.totalorder %s475_s9, 1  ;;  %s475_s9 = sphi %s492_s9, %s12_s9  }
   0x2   : > { %p113_p1 = scmp.lt.s32.totalorder %s475_s9, 3 }
   0x4   : > { %p114_p2 = pnand %p378_p0, %p113_p1 }
   0x5   : > { %v457_v0 = vld [vmem:[%s552_s1] sm:$0xff] (!%p114_p2)   ;;  %s379_s13 = sshll.u32 (!%p114_p2), %s374_s10, 3  ;;  %v458_v1 = vld [vmem:[%s552_s1 + $0x8] sm:$0xff] (!%p114_p2)   ;;  %v459_v2 = vld [vmem:[%s552_s1 + $0x10] sm:$0xff] (!%p114_p2)   ;;  %vm309_vm0 = vcmask (!%p114_p2), 64512  }
   0x6   : > { %117 = sbr.rel (%p114_p2) target bundleno = 254 (0xfe), region = 28  ;;  %p136_p3 = scmp.lt.s32.totalorder (!%p114_p2), %s379_s13, 15  ;;  %409 = vmatprep.subr.bf16.mxu0 (!%p114_p2), %v457_v0  ;;  %433 = vmatprep.subr.bf16.mxu1 (!%p114_p2), %v457_v0  ;;  %v460_v3 = vld [vmem:[%s552_s1 + $0x18] sm:$0xff] (!%p114_p2)   ;;  %v461_v6 = vld [vmem:[%s552_s1 + $0x20] sm:$0xff] (!%p114_p2)   ;;  %v462_v7 = vld [vmem:[%s552_s1 + $0x28] sm:$0xff] (!%p114_p2)  }
   0x7   : > { %410 = vmatpush3.bf16.msra.mxu0 (!%p114_p2), %v457_v0  ;;  %441 = vmatpush3.bf16.msra.mxu1 (!%p114_p2), %v457_v0  ;;  %v463_v8 = vld [vmem:[%s552_s1 + $0x30] sm:$0xff] (!%p114_p2)   ;;  %v464_v9 = vld [vmem:[%s552_s1 + $0x38] sm:$0xff] (!%p114_p2)  }
   0x8   : > { %411 = vmatprep.subr.bf16.mxu0 (!%p114_p2), %v458_v1  ;;  %434 = vmatprep.subr.bf16.mxu1 (!%p114_p2), %v458_v1 }
   0xb   : > { %412 = vmatpush3.bf16.msra.mxu0 (!%p114_p2), %v458_v1  ;;  %442 = vmatpush3.bf16.msra.mxu1 (!%p114_p2), %v458_v1 }
   0xc   : > { %413 = vmatprep.subr.bf16.mxu0 (!%p114_p2), %v459_v2  ;;  %435 = vmatprep.subr.bf16.mxu1 (!%p114_p2), %v459_v2 }
   0xd   : > { %s555_s13 = smov (!%p136_p3, %s379_s13), 15 }
   0xe   : > { %s380_s18 = sshll.u32 %s555_s13, 2  ;;  %s382_s4 = sshll.u32 %s555_s13, 3 }
   0xf   : > { %s515_s21 = scalar_lea.vmem %s551_s0, %s380_s18  ;;  %414 = vmatpush3.bf16.msra.mxu0 %v459_v2  ;;  %443 = vmatpush3.bf16.msra.mxu1 %v459_v2  ;;  %s145_s7 = scalar_lea.vmem %s553_s2, %s382_s4 }
  0x10   : > { %v465_v4 = vld [vmem:[%s515_s21] sm:$0xff]   ;;  %v466_v5 = vld [vmem:[%s515_s21 + $0x10] sm:$0xff]   ;;  %415 = vmatprep.subr.bf16.mxu0 %v460_v3  ;;  %436 = vmatprep.subr.bf16.mxu1 %v460_v3  ;;  %v467_v10 = vld [vmem:[%s515_s21 + $0x8] sm:$0xff]  }
  0x11   : > { %425 = vmatprep.mubr.bf16.mxu0 %v465_v4  ;;  %429 = vmatprep.mubr.bf16.mxu1 %v466_v5  ;;  %v468_v11 = vld [vmem:[%s515_s21 + $0x18] sm:$0xff]  }
  0x13   : > { %416 = vmatpush3.bf16.msra.mxu0 %v460_v3  ;;  %444 = vmatpush3.bf16.msra.mxu1 %v460_v3 }
  0x14   : > { %417 = vmatprep.subr.bf16.mxu0 %v461_v6  ;;  %437 = vmatprep.subr.bf16.mxu1 %v461_v6 }
  0x17   : > { %418 = vmatpush3.bf16.msra.mxu0 %v461_v6  ;;  %445 = vmatpush3.bf16.msra.mxu1 %v461_v6 }
  0x18   : > { %419 = vmatprep.subr.bf16.mxu0 %v462_v7  ;;  %438 = vmatprep.subr.bf16.mxu1 %v462_v7 }
  0x1b   : > { %420 = vmatpush3.bf16.msra.mxu0 %v462_v7  ;;  %446 = vmatpush3.bf16.msra.mxu1 %v462_v7 }
  0x1c   : > { %421 = vmatprep.subr.bf16.mxu0 %v463_v8  ;;  %439 = vmatprep.subr.bf16.mxu1 %v463_v8 }
  0x1f   : > { %422 = vmatpush3.bf16.msra.mxu0 %v463_v8  ;;  %447 = vmatpush3.bf16.msra.mxu1 %v463_v8 }
  0x20   : > { %423 = vmatprep.subr.bf16.mxu0 %v464_v9  ;;  %440 = vmatprep.subr.bf16.mxu1 %v464_v9 }
  0x23   : > { %424 = vmatpush3.bf16.msra.mxu0 %v464_v9  ;;  %448 = vmatpush3.bf16.msra.mxu1 %v464_v9 }
  0x26   : > { %426 = vmatmul.mubr.bf16.vlgmr.msra.gmra.mrb[0].mxu0 %v467_v10  ;;  %430 = vmatmul.mubr.bf16.vlgmr.msra.gmra.mrb[0].mxu1 %v468_v11 }
  0xf9   : > { %v427_v12 = vpop.f32.mrb[0].mxu0  ;;  %v431_v13 = vpop.f32.mrb[0].mxu1 }
  0xfa   : > { %312 = vst.msk [vmem:[%s145_s7 + $0x10] sm:$0xff] %vm309_vm0, %v427_v12  ;;  %316 = vst.msk [vmem:[%s145_s7 + $0x30] sm:$0xff] %vm309_vm0, %v431_v13  ;;  %v278_v14 = vpop.f32.mrb[1].mxu0  ;;  %v294_v15 = vpop.f32.mrb[1].mxu1 }
  0xfb   : > { %310 = vst.msk [vmem:[%s145_s7] sm:$0xff] %vm309_vm0, %v278_v14  ;;  %314 = vst.msk [vmem:[%s145_s7 + $0x20] sm:$0xff] %vm309_vm0, %v294_v15  ;;  %v428_v16 = vpop.f32.mrb[2].mxu0  ;;  %v432_v17 = vpop.f32.mrb[2].mxu1 }
  0xfc   : > { %313 = vst.msk [vmem:[%s145_s7 + $0x18] sm:$0xff] %vm309_vm0, %v428_v16  ;;  %317 = vst.msk [vmem:[%s145_s7 + $0x38] sm:$0xff] %vm309_vm0, %v432_v17  ;;  %v281_v18 = vpop.f32.mrb[3].mxu0  ;;  %v297_v19 = vpop.f32.mrb[3].mxu1 }
  0xfd   : > { %311 = vst.msk [vmem:[%s145_s7 + $0x8] sm:$0xff] %vm309_vm0, %v281_v18  ;;  %315 = vst.msk [vmem:[%s145_s7 + $0x28] sm:$0xff] %vm309_vm0, %v297_v19 }
  0xfe PF: > { %s12_s9 = sadd.s32 1, %s475_s9  }
  0xff   : > { %p9_p4 = scmp.ge.s32.totalorder %s12_s9, 4  }
 0x101   :  { %11 = sbr.rel (!%p9_p4) target bundleno = 1 (0x1), region = 58 }

// kernel: unet_forward.12
= control target key start
LH: loop header
LB: loop body
LE: loop exit
PB: predicated region body
PF: predicated region fallthrough
CT: control target
= control target key end

     0   :  { %s413_s9 = smov 0   ;;  %s454_s0 = inlined_call_operand.vmem [shape: bf16[32,128], index: 0, kind: input, shape index: {}]   ;;  %s455_s1 = inlined_call_operand.vmem [shape: bf16[128,8], index: 1, kind: input, shape index: {}]   ;;  %s456_s2 = inlined_call_operand.vmem [shape: f32[32,8], index: 2, kind: output, shape index: {}]  }
   0x1 LB: > { %s320_s10 = sadd.s32 4294967295, %s394_s9   ;;  %p324_p0 = scmp.ge.s32.totalorder %s394_s9, 1  ;;  %s394_s9 = sphi %s413_s9, %s12_s9  }
   0x2   : > { %p113_p1 = scmp.lt.s32.totalorder %s394_s9, 3 }
   0x4   : > { %p114_p2 = pnand %p324_p0, %p113_p1 }
   0x5   : > { %v379_v0 = vld [vmem:[%s455_s1] sm:$0xff] (!%p114_p2)   ;;  %v396_v1 = vmov (!%p114_p2), 0.0   ;;  %v380_v2 = vld [vmem:[%s455_s1 + $0x8] sm:$0xff] (!%p114_p2)   ;;  %vm397_vm0 = vmmov (!%p114_p2), 0   ;;  %s325_s15 = sshll.u32 (!%p114_p2), %s320_s10, 1  ;;  %v381_v3 = vld [vmem:[%s455_s1 + $0x10] sm:$0xff] (!%p114_p2)  }
   0x6   : > { %117 = sbr.rel (%p114_p2) target bundleno = 253 (0xfd), region = 28  ;;  %349 = vmatprep.subr.bf16.mxu0 (!%p114_p2), %v396_v1  ;;  %365 = vmatprep.mubr.msk.bf16.mxu0 (!%p114_p2), %vm397_vm0, %v396_v1  ;;  %p136_p3 = scmp.lt.s32.totalorder (!%p114_p2), %s325_s15, 3  ;;  %v382_v4 = vld [vmem:[%s455_s1 + $0x18] sm:$0xff] (!%p114_p2)   ;;  %v383_v5 = vld [vmem:[%s455_s1 + $0x20] sm:$0xff] (!%p114_p2)   ;;  %v384_v6 = vld [vmem:[%s455_s1 + $0x28] sm:$0xff] (!%p114_p2)   ;;  %vm261_vm1 = vcmask (!%p114_p2), 64512  }
   0x7   : > { %350 = vmatpush3.bf16.msra.mxu0 (!%p114_p2), %v379_v0  ;;  %v385_v7 = vld [vmem:[%s455_s1 + $0x30] sm:$0xff] (!%p114_p2)   ;;  %v386_v8 = vld [vmem:[%s455_s1 + $0x38] sm:$0xff] (!%p114_p2)  }
   0x8   : > { %351 = vmatprep.subr.bf16.mxu0 (!%p114_p2), %v396_v1 }
   0xb   : > { %352 = vmatpush3.bf16.msra.mxu0 (!%p114_p2), %v380_v2 }
   0xc   : > { %353 = vmatprep.subr.bf16.mxu0 (!%p114_p2), %v396_v1 }
   0xd   : > { %s458_s15 = smov (!%p136_p3, %s325_s15), 3 }
   0xe   : > { %s326_s18 = sshll.u32 %s458_s15, 2  ;;  %s328_s4 = sshll.u32 %s458_s15, 3 }
   0xf   : > { %s139_s21 = scalar_lea.vmem %s454_s0, %s326_s18  ;;  %354 = vmatpush3.bf16.msra.mxu0 %v381_v3  ;;  %s145_s7 = scalar_lea.vmem %s456_s2, %s328_s4 }
  0x10   : > { %355 = vmatprep.subr.bf16.mxu0 %v396_v1  ;;  %v387_v9 = vld [vmem:[%s139_s21] sm:$0xff]  }
  0x13   : > { %356 = vmatpush3.bf16.msra.mxu0 %v382_v4 }
  0x14   : > { %357 = vmatprep.subr.bf16.mxu0 %v396_v1 }
  0x17   : > { %358 = vmatpush3.bf16.msra.mxu0 %v383_v5 }
  0x18   : > { %359 = vmatprep.subr.bf16.mxu0 %v396_v1 }
  0x1b   : > { %360 = vmatpush3.bf16.msra.mxu0 %v384_v6 }
  0x1c   : > { %361 = vmatprep.subr.bf16.mxu0 %v396_v1 }
  0x1f   : > { %362 = vmatpush3.bf16.msra.mxu0 %v385_v7 }
  0x20   : > { %363 = vmatprep.subr.bf16.mxu0 %v396_v1 }
  0x23   : > { %364 = vmatpush3.bf16.msra.mxu0 %v386_v8 }
  0x26   : > { %366 = vmatmul.mubr.bf16.vlgmr.msra.gmra.mrb[0].mxu0 %v387_v9 }
  0xf9   : > { %v254_v10 = vpop.f32.mrb[0].mxu0 }
  0xfa   : > { %262 = vst.msk [vmem:[%s145_s7] sm:$0xff] %vm261_vm1, %v254_v10  ;;  %v367_v11 = vpop.f32.mrb[1].mxu0 }
  0xfb   : > { %v257_v12 = vpop.f32.mrb[2].mxu0 }
  0xfc   : > { %263 = vst.msk [vmem:[%s145_s7 + $0x8] sm:$0xff] %vm261_vm1, %v257_v12  ;;  %v368_v13 = vpop.f32.mrb[3].mxu0 }
  0xfd PF: > { %s12_s9 = sadd.s32 1, %s394_s9  }
  0xfe   : > { %p9_p4 = scmp.ge.s32.totalorder %s12_s9, 4  }
 0x100   :  { %11 = sbr.rel (!%p9_p4) target bundleno = 1 (0x1), region = 58 }

// kernel: unet_forward.13
= control target key start
LH: loop header
LB: loop body
LE: loop exit
PB: predicated region body
PF: predicated region fallthrough
CT: control target
= control target key end

     0   :  { %v170_v0 = vmov 0.0   ;;  %vm171_vm0 = vmmov 0   ;;  %vm117_vm1 = vcmask 130048   ;;  %s217_s1 = inlined_call_operand.vmem [shape: bf16[128,16], index: 1, kind: input, shape index: {}]   ;;  %s218_s0 = inlined_call_operand.vmem [shape: bf16[8,128], index: 0, kind: input, shape index: {}]   ;;  %s219_s2 = inlined_call_operand.vmem [shape: f32[8,16], index: 2, kind: output, shape index: {}]  }
   0x1   :  { %140 = vmatprep.subr.bf16.mxu0 %v170_v0  ;;  %v162_v1 = vld [vmem:[%s217_s1] sm:$0xff]   ;;  %156 = vmatprep.mubr.msk.bf16.mxu0 %vm171_vm0, %v170_v0  ;;  %v163_v2 = vld [vmem:[%s217_s1 + $0x8] sm:$0xff]   ;;  %v164_v3 = vld [vmem:[%s217_s1 + $0x10] sm:$0xff]  }
   0x2   :  { %141 = vmatpush3.bf16.msra.mxu0 %v162_v1  ;;  %v165_v4 = vld [vmem:[%s217_s1 + $0x18] sm:$0xff]   ;;  %v166_v5 = vld [vmem:[%s217_s1 + $0x20] sm:$0xff]   ;;  %v167_v6 = vld [vmem:[%s217_s1 + $0x28] sm:$0xff]  }
   0x3   :  { %142 = vmatprep.subr.bf16.mxu0 %v170_v0  ;;  %v168_v7 = vld [vmem:[%s217_s1 + $0x30] sm:$0xff]   ;;  %v169_v8 = vld [vmem:[%s217_s1 + $0x38] sm:$0xff]   ;;  %v12_v9 = vld [vmem:[%s218_s0] sm:$0xf] }
   0x6   :  { %143 = vmatpush3.bf16.msra.mxu0 %v163_v2 }
   0x7   :  { %144 = vmatprep.subr.bf16.mxu0 %v170_v0 }
   0xa   :  { %145 = vmatpush3.bf16.msra.mxu0 %v164_v3 }
   0xb   :  { %146 = vmatprep.subr.bf16.mxu0 %v170_v0 }
   0xe   :  { %147 = vmatpush3.bf16.msra.mxu0 %v165_v4 }
   0xf   :  { %148 = vmatprep.subr.bf16.mxu0 %v170_v0 }
  0x12   :  { %149 = vmatpush3.bf16.msra.mxu0 %v166_v5 }
  0x13   :  { %150 = vmatprep.subr.bf16.mxu0 %v170_v0 }
  0x16   :  { %151 = vmatpush3.bf16.msra.mxu0 %v167_v6 }
  0x17   :  { %152 = vmatprep.subr.bf16.mxu0 %v170_v0 }
  0x1a   :  { %153 = vmatpush3.bf16.msra.mxu0 %v168_v7 }
  0x1b   :  { %154 = vmatprep.subr.bf16.mxu0 %v170_v0 }
  0x1e   :  { %155 = vmatpush3.bf16.msra.mxu0 %v169_v8 }
  0x21   :  { %157 = vmatmul.mubr.bf16.vlgmr.msra.gmra.mrb[0].mxu0 %v12_v9 }
  0xf4   :  { %v111_v10 = vpop.f32.mrb[0].mxu0 }
  0xf5   :  { %118 = vst.msk [vmem:[%s219_s2] sm:$0xff] %vm117_vm1, %v111_v10  ;;  %v158_v11 = vpop.f32.mrb[1].mxu0 }
  0xf6   :  { %v114_v12 = vpop.f32.mrb[2].mxu0 }
  0xf7   :  { %v159_v13 = vpop.f32.mrb[3].mxu0 }

// kernel: unet_forward.14
= control target key start
LH: loop header
LB: loop body
LE: loop exit
PB: predicated region body
PF: predicated region fallthrough
CT: control target
= control target key end

     0   :  { %vm188_vm0 = vcmask 130048   ;;  %s321_s1 = inlined_call_operand.vmem [shape: bf16[256,16], index: 1, kind: input, shape index: {}]   ;;  %s322_s0 = inlined_call_operand.vmem [shape: bf16[8,256], index: 0, kind: input, shape index: {}]   ;;  %s323_s2 = inlined_call_operand.vmem [shape: f32[8,16], index: 2, kind: output, shape index: {}]  }
   0x1   :  { %v234_v0 = vld [vmem:[%s321_s1 + $0x40] sm:$0xff]   ;;  %v236_v2 = vld [vmem:[%s321_s1 + $0x48] sm:$0xff]   ;;  %v238_v4 = vld [vmem:[%s321_s1 + $0x50] sm:$0xff]  }
   0x2   :  { %v235_v1 = vld [vmem:[%s321_s1] sm:$0xff]   ;;  %212 = vmatprep.subr.bf16.mxu0 %v234_v0  ;;  %v237_v3 = vld [vmem:[%s321_s1 + $0x8] sm:$0xff]   ;;  %v239_v5 = vld [vmem:[%s321_s1 + $0x10] sm:$0xff]  }
   0x3   :  { %213 = vmatpush3.bf16.msra.mxu0 %v235_v1  ;;  %v240_v6 = vld [vmem:[%s321_s1 + $0x58] sm:$0xff]   ;;  %v242_v8 = vld [vmem:[%s321_s1 + $0x60] sm:$0xff]   ;;  %v244_v10 = vld [vmem:[%s321_s1 + $0x68] sm:$0xff]  }
   0x4   :  { %214 = vmatprep.subr.bf16.mxu0 %v236_v2  ;;  %v241_v7 = vld [vmem:[%s321_s1 + $0x18] sm:$0xff]   ;;  %v243_v9 = vld [vmem:[%s321_s1 + $0x20] sm:$0xff]   ;;  %v245_v13 = vld [vmem:[%s321_s1 + $0x28] sm:$0xff]  }
   0x5   :  { %v12_v11 = vld [vmem:[%s322_s0] sm:$0xff]  ;;  %v246_v14 = vld [vmem:[%s321_s1 + $0x70] sm:$0xff]   ;;  %v248_v16 = vld [vmem:[%s321_s1 + $0x78] sm:$0xff]  }
   0x6   :  { %v195_v12 = vcombine.high %v12_v11, %v12_v11  ;;  %v247_v15 = vld [vmem:[%s321_s1 + $0x30] sm:$0xff]   ;;  %v249_v17 = vld [vmem:[%s321_s1 + $0x38] sm:$0xff]   ;;  %v194_v18 = vcombine.low %v12_v11, %v12_v11 }
   0x7   :  { %215 = vmatpush3.bf16.msra.mxu0 %v237_v3 }
   0x8   :  { %216 = vmatprep.subr.bf16.mxu0 %v238_v4  ;;  %180 = vmatprep.mubr.bf16.mxu0 %v195_v12 }
   0xb   :  { %217 = vmatpush3.bf16.msra.mxu0 %v239_v5 }
   0xc   :  { %218 = vmatprep.subr.bf16.mxu0 %v240_v6 }
   0xf   :  { %219 = vmatpush3.bf16.msra.mxu0 %v241_v7 }
  0x10   :  { %220 = vmatprep.subr.bf16.mxu0 %v242_v8 }
  0x13   :  { %221 = vmatpush3.bf16.msra.mxu0 %v243_v9 }
  0x14   :  { %222 = vmatprep.subr.bf16.mxu0 %v244_v10 }
  0x17   :  { %223 = vmatpush3.bf16.msra.mxu0 %v245_v13 }
  0x18   :  { %224 = vmatprep.subr.bf16.mxu0 %v246_v14 }
  0x1b   :  { %225 = vmatpush3.bf16.msra.mxu0 %v247_v15 }
  0x1c   :  { %226 = vmatprep.subr.bf16.mxu0 %v248_v16 }
  0x1f   :  { %227 = vmatpush3.bf16.msra.mxu0 %v249_v17 }
  0x22   :  { %181 = vmatmul.mubr.bf16.vlgmr.msra.gmra.mrb[0].mxu0 %v194_v18 }
  0xf5   :  { %v228_v19 = vpop.f32.mrb[0].mxu0 }
  0xf6   :  { %v229_v20 = vpop.f32.mrb[1].mxu0 }
  0xf7   :  { %v230_v21 = vadd.f32 %v229_v20, %v228_v19  ;;  %v231_v22 = vpop.f32.mrb[2].mxu0 }
  0xf8   :  { %v232_v23 = vpop.f32.mrb[3].mxu0 }
  0xf9   :  { %189 = vst.msk [vmem:[%s323_s2] sm:$0xff] %vm188_vm0, %v230_v21 }

// kernel: unet_forward.15
= control target key start
LH: loop header
LB: loop body
LE: loop exit
PB: predicated region body
PF: predicated region fallthrough
CT: control target
= control target key end

     0   :  { %vm188_vm0 = vcmask 523264   ;;  %s321_s1 = inlined_call_operand.vmem [shape: bf16[256,64], index: 1, kind: input, shape index: {}]   ;;  %s322_s0 = inlined_call_operand.vmem [shape: bf16[8,256], index: 0, kind: input, shape index: {}]   ;;  %s323_s2 = inlined_call_operand.vmem [shape: f32[8,64], index: 2, kind: output, shape index: {}]  }
   0x1   :  { %v234_v0 = vld [vmem:[%s321_s1 + $0x40] sm:$0xff]   ;;  %v236_v2 = vld [vmem:[%s321_s1 + $0x48] sm:$0xff]   ;;  %v238_v4 = vld [vmem:[%s321_s1 + $0x50] sm:$0xff]  }
   0x2   :  { %v235_v1 = vld [vmem:[%s321_s1] sm:$0xff]   ;;  %212 = vmatprep.subr.bf16.mxu0 %v234_v0  ;;  %v237_v3 = vld [vmem:[%s321_s1 + $0x8] sm:$0xff]   ;;  %v239_v5 = vld [vmem:[%s321_s1 + $0x10] sm:$0xff]  }
   0x3   :  { %213 = vmatpush3.bf16.msra.mxu0 %v235_v1  ;;  %v240_v6 = vld [vmem:[%s321_s1 + $0x58] sm:$0xff]   ;;  %v242_v8 = vld [vmem:[%s321_s1 + $0x60] sm:$0xff]   ;;  %v244_v10 = vld [vmem:[%s321_s1 + $0x68] sm:$0xff]  }
   0x4   :  { %214 = vmatprep.subr.bf16.mxu0 %v236_v2  ;;  %v241_v7 = vld [vmem:[%s321_s1 + $0x18] sm:$0xff]   ;;  %v243_v9 = vld [vmem:[%s321_s1 + $0x20] sm:$0xff]   ;;  %v245_v13 = vld [vmem:[%s321_s1 + $0x28] sm:$0xff]  }
   0x5   :  { %v12_v11 = vld [vmem:[%s322_s0] sm:$0xff]  ;;  %v246_v14 = vld [vmem:[%s321_s1 + $0x70] sm:$0xff]   ;;  %v248_v16 = vld [vmem:[%s321_s1 + $0x78] sm:$0xff]  }
   0x6   :  { %v195_v12 = vcombine.high %v12_v11, %v12_v11  ;;  %v247_v15 = vld [vmem:[%s321_s1 + $0x30] sm:$0xff]   ;;  %v249_v17 = vld [vmem:[%s321_s1 + $0x38] sm:$0xff]   ;;  %v194_v18 = vcombine.low %v12_v11, %v12_v11 }
   0x7   :  { %215 = vmatpush3.bf16.msra.mxu0 %v237_v3 }
   0x8   :  { %216 = vmatprep.subr.bf16.mxu0 %v238_v4  ;;  %180 = vmatprep.mubr.bf16.mxu0 %v195_v12 }
   0xb   :  { %217 = vmatpush3.bf16.msra.mxu0 %v239_v5 }
   0xc   :  { %218 = vmatprep.subr.bf16.mxu0 %v240_v6 }
   0xf   :  { %219 = vmatpush3.bf16.msra.mxu0 %v241_v7 }
  0x10   :  { %220 = vmatprep.subr.bf16.mxu0 %v242_v8 }
  0x13   :  { %221 = vmatpush3.bf16.msra.mxu0 %v243_v9 }
  0x14   :  { %222 = vmatprep.subr.bf16.mxu0 %v244_v10 }
  0x17   :  { %223 = vmatpush3.bf16.msra.mxu0 %v245_v13 }
  0x18   :  { %224 = vmatprep.subr.bf16.mxu0 %v246_v14 }
  0x1b   :  { %225 = vmatpush3.bf16.msra.mxu0 %v247_v15 }
  0x1c   :  { %226 = vmatprep.subr.bf16.mxu0 %v248_v16 }
  0x1f   :  { %227 = vmatpush3.bf16.msra.mxu0 %v249_v17 }
  0x22   :  { %181 = vmatmul.mubr.bf16.vlgmr.msra.gmra.mrb[0].mxu0 %v194_v18 }
  0xf5   :  { %v228_v19 = vpop.f32.mrb[0].mxu0 }
  0xf6   :  { %v229_v20 = vpop.f32.mrb[1].mxu0 }
  0xf7   :  { %v230_v21 = vadd.f32 %v229_v20, %v228_v19  ;;  %v231_v22 = vpop.f32.mrb[2].mxu0 }
  0xf8   :  { %v232_v23 = vpop.f32.mrb[3].mxu0 }
  0xf9   :  { %189 = vst.msk [vmem:[%s323_s2] sm:$0xff] %vm188_vm0, %v230_v21 }

// kernel: unet_forward.16
= control target key start
LH: loop header
LB: loop body
LE: loop exit
PB: predicated region body
PF: predicated region fallthrough
CT: control target
= control target key end

     0   :  { %v410_v1 = vmov 0.0   ;;  %vm411_vm0 = vmmov 0   ;;  %vm297_vm1 = vcmask 261120   ;;  %s508_s1 = inlined_call_operand.vmem [shape: bf16[384,32], index: 1, kind: input, shape index: {}]   ;;  %s509_s0 = inlined_call_operand.vmem [shape: bf16[8,384], index: 0, kind: input, shape index: {}]   ;;  %s510_s2 = inlined_call_operand.vmem [shape: f32[8,32], index: 2, kind: output, shape index: {}]  }
   0x1   :  { %v383_v0 = vld [vmem:[%s508_s1 + $0x40] sm:$0xff]   ;;  %361 = vmatprep.subr.bf16.mxu1 %v410_v1  ;;  %377 = vmatprep.mubr.msk.bf16.mxu1 %vm411_vm0, %v410_v1  ;;  %v386_v4 = vld [vmem:[%s508_s1 + $0x48] sm:$0xff]   ;;  %v389_v7 = vld [vmem:[%s508_s1 + $0x50] sm:$0xff]  }
   0x2   :  { %v384_v2 = vld [vmem:[%s508_s1] sm:$0xff]   ;;  %330 = vmatprep.subr.bf16.mxu0 %v383_v0  ;;  %v387_v5 = vld [vmem:[%s508_s1 + $0x8] sm:$0xff]   ;;  %v390_v8 = vld [vmem:[%s508_s1 + $0x10] sm:$0xff]  }
   0x3   :  { %v385_v3 = vld [vmem:[%s508_s1 + $0x80] sm:$0xff]   ;;  %331 = vmatpush3.bf16.msra.mxu0 %v384_v2  ;;  %v388_v6 = vld [vmem:[%s508_s1 + $0x88] sm:$0xff]   ;;  %v391_v9 = vld [vmem:[%s508_s1 + $0x90] sm:$0xff]  }
   0x4   :  { %362 = vmatpush3.bf16.msra.mxu1 %v385_v3  ;;  %332 = vmatprep.subr.bf16.mxu0 %v386_v4  ;;  %v392_v10 = vld [vmem:[%s508_s1 + $0x58] sm:$0xff]   ;;  %v395_v13 = vld [vmem:[%s508_s1 + $0x60] sm:$0xff]   ;;  %v398_v16 = vld [vmem:[%s508_s1 + $0x68] sm:$0xff]  }
   0x5   :  { %363 = vmatprep.subr.bf16.mxu1 %v410_v1  ;;  %v393_v11 = vld [vmem:[%s508_s1 + $0x18] sm:$0xff]   ;;  %v396_v14 = vld [vmem:[%s508_s1 + $0x20] sm:$0xff]   ;;  %v399_v17 = vld [vmem:[%s508_s1 + $0x28] sm:$0xff]  }
   0x6   :  { %v394_v12 = vld [vmem:[%s508_s1 + $0x98] sm:$0xff]   ;;  %v397_v15 = vld [vmem:[%s508_s1 + $0xa0] sm:$0xff]   ;;  %v400_v18 = vld [vmem:[%s508_s1 + $0xa8] sm:$0xff]  }
   0x7   :  { %333 = vmatpush3.bf16.msra.mxu0 %v387_v5  ;;  %v401_v19 = vld [vmem:[%s508_s1 + $0x70] sm:$0xff]   ;;  %v404_v22 = vld [vmem:[%s508_s1 + $0x78] sm:$0xff]   ;;  %v12_v23 = vld [vmem:[%s509_s0] sm:$0xff] }
   0x8   :  { %364 = vmatpush3.bf16.msra.mxu1 %v388_v6  ;;  %334 = vmatprep.subr.bf16.mxu0 %v389_v7  ;;  %v402_v20 = vld [vmem:[%s508_s1 + $0x30] sm:$0xff]   ;;  %v304_v24 = vcombine.high %v12_v23, %v12_v23  ;;  %v405_v25 = vld [vmem:[%s508_s1 + $0x38] sm:$0xff]   ;;  %v303_v27 = vcombine.low %v12_v23, %v12_v23  ;;  %v409_v28 = vld [vmem:[%s509_s0 + $0x8] ss:$0 sps:$4 sm:$0xff]  }
   0x9   :  { %365 = vmatprep.subr.bf16.mxu1 %v410_v1  ;;  %v403_v21 = vld [vmem:[%s508_s1 + $0xb0] sm:$0xff]   ;;  %v406_v26 = vld [vmem:[%s508_s1 + $0xb8] sm:$0xff]  }
   0xa   :  { %249 = vmatprep.mubr.bf16.mxu0 %v304_v24 }
   0xb   :  { %335 = vmatpush3.bf16.msra.mxu0 %v390_v8 }
   0xc   :  { %366 = vmatpush3.bf16.msra.mxu1 %v391_v9  ;;  %336 = vmatprep.subr.bf16.mxu0 %v392_v10 }
   0xd   :  { %367 = vmatprep.subr.bf16.mxu1 %v410_v1 }
   0xf   :  { %337 = vmatpush3.bf16.msra.mxu0 %v393_v11 }
  0x10   :  { %368 = vmatpush3.bf16.msra.mxu1 %v394_v12  ;;  %338 = vmatprep.subr.bf16.mxu0 %v395_v13 }
  0x11   :  { %369 = vmatprep.subr.bf16.mxu1 %v410_v1 }
  0x13   :  { %339 = vmatpush3.bf16.msra.mxu0 %v396_v14 }
  0x14   :  { %370 = vmatpush3.bf16.msra.mxu1 %v397_v15  ;;  %340 = vmatprep.subr.bf16.mxu0 %v398_v16 }
  0x15   :  { %371 = vmatprep.subr.bf16.mxu1 %v410_v1 }
  0x17   :  { %341 = vmatpush3.bf16.msra.mxu0 %v399_v17 }
  0x18   :  { %372 = vmatpush3.bf16.msra.mxu1 %v400_v18  ;;  %342 = vmatprep.subr.bf16.mxu0 %v401_v19 }
  0x19   :  { %373 = vmatprep.subr.bf16.mxu1 %v410_v1 }
  0x1b   :  { %343 = vmatpush3.bf16.msra.mxu0 %v402_v20 }
  0x1c   :  { %374 = vmatpush3.bf16.msra.mxu1 %v403_v21  ;;  %344 = vmatprep.subr.bf16.mxu0 %v404_v22 }
  0x1d   :  { %375 = vmatprep.subr.bf16.mxu1 %v410_v1 }
  0x1f   :  { %345 = vmatpush3.bf16.msra.mxu0 %v405_v25 }
  0x20   :  { %376 = vmatpush3.bf16.msra.mxu1 %v406_v26 }
  0x22   :  { %250 = vmatmul.mubr.bf16.vlgmr.msra.gmra.mrb[0].mxu0 %v303_v27 }
  0x23   :  { %378 = vmatmul.mubr.bf16.vlgmr.msra.gmra.mrb[0].mxu1 %v409_v28 }
  0xf5   :  { %v346_v29 = vpop.f32.mrb[0].mxu0 }
  0xf6   :  { %v291_v30 = vpop.f32.mrb[0].mxu1  ;;  %v347_v31 = vpop.f32.mrb[1].mxu0 }
  0xf7   :  { %v348_v32 = vadd.f32 %v347_v31, %v346_v29  ;;  %v379_v33 = vpop.f32.mrb[1].mxu1  ;;  %v349_v34 = vpop.f32.mrb[2].mxu0 }
  0xf8   :  { %v294_v35 = vpop.f32.mrb[2].mxu1  ;;  %v350_v36 = vpop.f32.mrb[3].mxu0 }
  0xf9   :  { %v292_v37 = vadd.f32 %v348_v32, %v291_v30  ;;  %v380_v38 = vpop.f32.mrb[3].mxu1 }
  0xfb   :  { %298 = vst.msk [vmem:[%s510_s2] sm:$0xff] %vm297_vm1, %v292_v37 }

// kernel: unet_forward.17
= control target key start
LH: loop header
LB: loop body
LE: loop exit
PB: predicated region body
PF: predicated region fallthrough
CT: control target
= control target key end

     0   :  { %s494_s9 = smov 0   ;;  %s562_s0 = inlined_call_operand.vmem [shape: bf16[32,256], index: 0, kind: input, shape index: {}]   ;;  %s563_s1 = inlined_call_operand.vmem [shape: bf16[256,16], index: 1, kind: input, shape index: {}]   ;;  %s564_s2 = inlined_call_operand.vmem [shape: f32[32,16], index: 2, kind: output, shape index: {}]  }
   0x1 LB: > { %s391_s10 = sadd.s32 4294967295, %s477_s9   ;;  %p395_p0 = scmp.ge.s32.totalorder %s477_s9, 1  ;;  %s477_s9 = sphi %s494_s9, %s12_s9  }
   0x2   : > { %p114_p1 = scmp.lt.s32.totalorder %s477_s9, 3 }
   0x4   : > { %p115_p2 = pnand %p395_p0, %p114_p1 }
   0x5   : > { %v452_v0 = vld [vmem:[%s563_s1 + $0x40] sm:$0xff] (!%p115_p2)   ;;  %s396_s13 = sshll.u32 (!%p115_p2), %s391_s10, 1  ;;  %v454_v2 = vld [vmem:[%s563_s1 + $0x48] sm:$0xff] (!%p115_p2)   ;;  %v456_v4 = vld [vmem:[%s563_s1 + $0x50] sm:$0xff] (!%p115_p2)   ;;  %vm332_vm0 = vcmask (!%p115_p2), 130048  }
   0x6   : > { %118 = sbr.rel (%p115_p2) target bundleno = 256 (0x100), region = 28  ;;  %v453_v1 = vld [vmem:[%s563_s1] sm:$0xff] (!%p115_p2)   ;;  %422 = vmatprep.subr.bf16.mxu0 (!%p115_p2), %v452_v0  ;;  %v455_v3 = vld [vmem:[%s563_s1 + $0x8] sm:$0xff] (!%p115_p2)   ;;  %p138_p3 = scmp.lt.s32.totalorder (!%p115_p2), %s396_s13, 3  ;;  %v457_v5 = vld [vmem:[%s563_s1 + $0x10] sm:$0xff] (!%p115_p2)  }
   0x7   : > { %423 = vmatpush3.bf16.msra.mxu0 (!%p115_p2), %v453_v1  ;;  %v458_v6 = vld [vmem:[%s563_s1 + $0x58] sm:$0xff] (!%p115_p2)   ;;  %v460_v8 = vld [vmem:[%s563_s1 + $0x60] sm:$0xff] (!%p115_p2)   ;;  %v462_v10 = vld [vmem:[%s563_s1 + $0x68] sm:$0xff] (!%p115_p2)  }
   0x8   : > { %424 = vmatprep.subr.bf16.mxu0 (!%p115_p2), %v454_v2  ;;  %v459_v7 = vld [vmem:[%s563_s1 + $0x18] sm:$0xff] (!%p115_p2)   ;;  %v461_v9 = vld [vmem:[%s563_s1 + $0x20] sm:$0xff] (!%p115_p2)   ;;  %v463_v12 = vld [vmem:[%s563_s1 + $0x28] sm:$0xff] (!%p115_p2)  }
   0x9   : > { %v464_v13 = vld [vmem:[%s563_s1 + $0x70] sm:$0xff] (!%p115_p2)   ;;  %v466_v15 = vld [vmem:[%s563_s1 + $0x78] sm:$0xff] (!%p115_p2)  }
   0xa   : > { %v465_v14 = vld [vmem:[%s563_s1 + $0x30] sm:$0xff] (!%p115_p2)   ;;  %v467_v16 = vld [vmem:[%s563_s1 + $0x38] sm:$0xff] (!%p115_p2)  }
   0xb   : > { %425 = vmatpush3.bf16.msra.mxu0 (!%p115_p2), %v455_v3 }
   0xc   : > { %426 = vmatprep.subr.bf16.mxu0 (!%p115_p2), %v456_v4 }
   0xd   : > { %s566_s13 = smov (!%p138_p3, %s396_s13), 3 }
   0xe   : > { %s421_s28 = sshll.u32 %s566_s13, 3 }
   0xf   : > { %427 = vmatpush3.bf16.msra.mxu0 %v457_v5  ;;  %s142_s5 = scalar_lea.vmem %s562_s0, %s421_s28  ;;  %s148_s23 = scalar_lea.vmem %s564_s2, %s421_s28 }
  0x10   : > { %428 = vmatprep.subr.bf16.mxu0 %v458_v6  ;;  %v470_v11 = vld [vmem:[%s142_s5 + $0x4] ss:$8 sps:$4 sm:$0xff]   ;;  %v468_v17 = vld [vmem:[%s142_s5] ss:$8 sps:$4 sm:$0xff]  }
  0x11   : > { %323 = vmatprep.mubr.bf16.mxu0 %v470_v11 }
  0x13   : > { %429 = vmatpush3.bf16.msra.mxu0 %v459_v7 }
  0x14   : > { %430 = vmatprep.subr.bf16.mxu0 %v460_v8 }
  0x17   : > { %431 = vmatpush3.bf16.msra.mxu0 %v461_v9 }
  0x18   : > { %432 = vmatprep.subr.bf16.mxu0 %v462_v10 }
  0x1b   : > { %433 = vmatpush3.bf16.msra.mxu0 %v463_v12 }
  0x1c   : > { %434 = vmatprep.subr.bf16.mxu0 %v464_v13 }
  0x1f   : > { %435 = vmatpush3.bf16.msra.mxu0 %v465_v14 }
  0x20   : > { %436 = vmatprep.subr.bf16.mxu0 %v466_v15 }
  0x23   : > { %437 = vmatpush3.bf16.msra.mxu0 %v467_v16 }
  0x26   : > { %324 = vmatmul.mubr.bf16.vlgmr.msra.gmra.mrb[0].mxu0 %v468_v17 }
  0xf9   : > { %v438_v18 = vpop.f32.mrb[0].mxu0 }
  0xfa   : > { %v439_v19 = vpop.f32.mrb[1].mxu0 }
  0xfb   : > { %v440_v20 = vadd.f32 %v439_v19, %v438_v18  ;;  %v441_v21 = vpop.f32.mrb[2].mxu0 }
  0xfc   : > { %v442_v22 = vpop.f32.mrb[3].mxu0 }
  0xfd   : > { %333 = vst.msk [vmem:[%s148_s23] sm:$0xff] %vm332_vm0, %v440_v20  ;;  %v443_v23 = vadd.f32 %v442_v22, %v441_v21 }
  0xff   : > { %334 = vst.msk [vmem:[%s148_s23 + $0x8] sm:$0xff] %vm332_vm0, %v443_v23 }
 0x100 PF: > { %s12_s9 = sadd.s32 1, %s477_s9  }
 0x101   : > { %p9_p4 = scmp.ge.s32.totalorder %s12_s9, 4  }
 0x103   :  { %11 = sbr.rel (!%p9_p4) target bundleno = 1 (0x1), region = 58 }

// kernel: unet_forward.18
= control target key start
LH: loop header
LB: loop body
LE: loop exit
PB: predicated region body
PF: predicated region fallthrough
CT: control target
= control target key end

     0   :  { %s492_s9 = smov 0   ;;  %s551_s0 = inlined_call_operand.vmem [shape: bf16[128,128], index: 0, kind: input, shape index: {}]   ;;  %s552_s1 = inlined_call_operand.vmem [shape: bf16[128,8], index: 1, kind: input, shape index: {}]   ;;  %s553_s2 = inlined_call_operand.vmem [shape: f32[128,8], index: 2, kind: output, shape index: {}]  }
   0x1 LB: > { %s374_s10 = sadd.s32 4294967295, %s475_s9   ;;  %p378_p0 = scmp.ge.s32.totalorder %s475_s9, 1  ;;  %s475_s9 = sphi %s492_s9, %s12_s9  }
   0x2   : > { %p113_p1 = scmp.lt.s32.totalorder %s475_s9, 3 }
   0x4   : > { %p114_p2 = pnand %p378_p0, %p113_p1 }
   0x5   : > { %v457_v0 = vld [vmem:[%s552_s1] sm:$0xff] (!%p114_p2)   ;;  %s379_s13 = sshll.u32 (!%p114_p2), %s374_s10, 3  ;;  %v458_v1 = vld [vmem:[%s552_s1 + $0x8] sm:$0xff] (!%p114_p2)   ;;  %v459_v2 = vld [vmem:[%s552_s1 + $0x10] sm:$0xff] (!%p114_p2)   ;;  %vm309_vm0 = vcmask (!%p114_p2), 64512  }
   0x6   : > { %117 = sbr.rel (%p114_p2) target bundleno = 254 (0xfe), region = 28  ;;  %p136_p3 = scmp.lt.s32.totalorder (!%p114_p2), %s379_s13, 15  ;;  %409 = vmatprep.subr.bf16.mxu0 (!%p114_p2), %v457_v0  ;;  %433 = vmatprep.subr.bf16.mxu1 (!%p114_p2), %v457_v0  ;;  %v460_v3 = vld [vmem:[%s552_s1 + $0x18] sm:$0xff] (!%p114_p2)   ;;  %v461_v6 = vld [vmem:[%s552_s1 + $0x20] sm:$0xff] (!%p114_p2)   ;;  %v462_v7 = vld [vmem:[%s552_s1 + $0x28] sm:$0xff] (!%p114_p2)  }
   0x7   : > { %410 = vmatpush3.bf16.msra.mxu0 (!%p114_p2), %v457_v0  ;;  %441 = vmatpush3.bf16.msra.mxu1 (!%p114_p2), %v457_v0  ;;  %v463_v8 = vld [vmem:[%s552_s1 + $0x30] sm:$0xff] (!%p114_p2)   ;;  %v464_v9 = vld [vmem:[%s552_s1 + $0x38] sm:$0xff] (!%p114_p2)  }
   0x8   : > { %411 = vmatprep.subr.bf16.mxu0 (!%p114_p2), %v458_v1  ;;  %434 = vmatprep.subr.bf16.mxu1 (!%p114_p2), %v458_v1 }
   0xb   : > { %412 = vmatpush3.bf16.msra.mxu0 (!%p114_p2), %v458_v1  ;;  %442 = vmatpush3.bf16.msra.mxu1 (!%p114_p2), %v458_v1 }
   0xc   : > { %413 = vmatprep.subr.bf16.mxu0 (!%p114_p2), %v459_v2  ;;  %435 = vmatprep.subr.bf16.mxu1 (!%p114_p2), %v459_v2 }
   0xd   : > { %s555_s13 = smov (!%p136_p3, %s379_s13), 15 }
   0xe   : > { %s380_s18 = sshll.u32 %s555_s13, 2  ;;  %s382_s4 = sshll.u32 %s555_s13, 3 }
   0xf   : > { %s515_s21 = scalar_lea.vmem %s551_s0, %s380_s18  ;;  %414 = vmatpush3.bf16.msra.mxu0 %v459_v2  ;;  %443 = vmatpush3.bf16.msra.mxu1 %v459_v2  ;;  %s145_s7 = scalar_lea.vmem %s553_s2, %s382_s4 }
  0x10   : > { %v465_v4 = vld [vmem:[%s515_s21] sm:$0xff]   ;;  %v466_v5 = vld [vmem:[%s515_s21 + $0x10] sm:$0xff]   ;;  %415 = vmatprep.subr.bf16.mxu0 %v460_v3  ;;  %436 = vmatprep.subr.bf16.mxu1 %v460_v3  ;;  %v467_v10 = vld [vmem:[%s515_s21 + $0x8] sm:$0xff]  }
  0x11   : > { %425 = vmatprep.mubr.bf16.mxu0 %v465_v4  ;;  %429 = vmatprep.mubr.bf16.mxu1 %v466_v5  ;;  %v468_v11 = vld [vmem:[%s515_s21 + $0x18] sm:$0xff]  }
  0x13   : > { %416 = vmatpush3.bf16.msra.mxu0 %v460_v3  ;;  %444 = vmatpush3.bf16.msra.mxu1 %v460_v3 }
  0x14   : > { %417 = vmatprep.subr.bf16.mxu0 %v461_v6  ;;  %437 = vmatprep.subr.bf16.mxu1 %v461_v6 }
  0x17   : > { %418 = vmatpush3.bf16.msra.mxu0 %v461_v6  ;;  %445 = vmatpush3.bf16.msra.mxu1 %v461_v6 }
  0x18   : > { %419 = vmatprep.subr.bf16.mxu0 %v462_v7  ;;  %438 = vmatprep.subr.bf16.mxu1 %v462_v7 }
  0x1b   : > { %420 = vmatpush3.bf16.msra.mxu0 %v462_v7  ;;  %446 = vmatpush3.bf16.msra.mxu1 %v462_v7 }
  0x1c   : > { %421 = vmatprep.subr.bf16.mxu0 %v463_v8  ;;  %439 = vmatprep.subr.bf16.mxu1 %v463_v8 }
  0x1f   : > { %422 = vmatpush3.bf16.msra.mxu0 %v463_v8  ;;  %447 = vmatpush3.bf16.msra.mxu1 %v463_v8 }
  0x20   : > { %423 = vmatprep.subr.bf16.mxu0 %v464_v9  ;;  %440 = vmatprep.subr.bf16.mxu1 %v464_v9 }
  0x23   : > { %424 = vmatpush3.bf16.msra.mxu0 %v464_v9  ;;  %448 = vmatpush3.bf16.msra.mxu1 %v464_v9 }
  0x26   : > { %426 = vmatmul.mubr.bf16.vlgmr.msra.gmra.mrb[0].mxu0 %v467_v10  ;;  %430 = vmatmul.mubr.bf16.vlgmr.msra.gmra.mrb[0].mxu1 %v468_v11 }
  0xf9   : > { %v427_v12 = vpop.f32.mrb[0].mxu0  ;;  %v431_v13 = vpop.f32.mrb[0].mxu1 }
  0xfa   : > { %312 = vst.msk [vmem:[%s145_s7 + $0x10] sm:$0xff] %vm309_vm0, %v427_v12  ;;  %316 = vst.msk [vmem:[%s145_s7 + $0x30] sm:$0xff] %vm309_vm0, %v431_v13  ;;  %v278_v14 = vpop.f32.mrb[1].mxu0  ;;  %v294_v15 = vpop.f32.mrb[1].mxu1 }
  0xfb   : > { %310 = vst.msk [vmem:[%s145_s7] sm:$0xff] %vm309_vm0, %v278_v14  ;;  %314 = vst.msk [vmem:[%s145_s7 + $0x20] sm:$0xff] %vm309_vm0, %v294_v15  ;;  %v428_v16 = vpop.f32.mrb[2].mxu0  ;;  %v432_v17 = vpop.f32.mrb[2].mxu1 }
  0xfc   : > { %313 = vst.msk [vmem:[%s145_s7 + $0x18] sm:$0xff] %vm309_vm0, %v428_v16  ;;  %317 = vst.msk [vmem:[%s145_s7 + $0x38] sm:$0xff] %vm309_vm0, %v432_v17  ;;  %v281_v18 = vpop.f32.mrb[3].mxu0  ;;  %v297_v19 = vpop.f32.mrb[3].mxu1 }
  0xfd   : > { %311 = vst.msk [vmem:[%s145_s7 + $0x8] sm:$0xff] %vm309_vm0, %v281_v18  ;;  %315 = vst.msk [vmem:[%s145_s7 + $0x28] sm:$0xff] %vm309_vm0, %v297_v19 }
  0xfe PF: > { %s12_s9 = sadd.s32 1, %s475_s9  }
  0xff   : > { %p9_p4 = scmp.ge.s32.totalorder %s12_s9, 4  }
 0x101   :  { %11 = sbr.rel (!%p9_p4) target bundleno = 1 (0x1), region = 58 }

// kernel: unet_forward.19
= control target key start
LH: loop header
LB: loop body
LE: loop exit
PB: predicated region body
PF: predicated region fallthrough
CT: control target
= control target key end

     0   :  { %s864_s9 = smov 0   ;;  %s993_s0 = inlined_call_operand.vmem [shape: bf16[512,128], index: 0, kind: input, shape index: {}]   ;;  %s994_s1 = inlined_call_operand.vmem [shape: bf16[128,8], index: 1, kind: input, shape index: {}]   ;;  %s995_s2 = inlined_call_operand.vmem [shape: f32[512,8], index: 2, kind: output, shape index: {}]  }
   0x1 LB: > { %s622_s10 = sadd.s32 4294967295, %s847_s9   ;;  %p626_p0 = scmp.ge.s32.totalorder %s847_s9, 1  ;;  %s847_s9 = sphi %s864_s9, %s12_s9  }
   0x2   : > { %p113_p1 = scmp.lt.s32.totalorder %s847_s9, 3 }
   0x4   : > { %p114_p2 = pnand %p626_p0, %p113_p1 }
   0x5   : > { %v753_v0 = vld [vmem:[%s994_s1] sm:$0xff] (!%p114_p2)   ;;  %s627_s13 = sshll.u32 (!%p114_p2), %s622_s10, 5  ;;  %v754_v1 = vld [vmem:[%s994_s1 + $0x8] sm:$0xff] (!%p114_p2)   ;;  %v755_v2 = vld [vmem:[%s994_s1 + $0x10] sm:$0xff] (!%p114_p2)   ;;  %vm533_vm0 = vcmask (!%p114_p2), 64512  }
   0x6   : > { %117 = sbr.rel (%p114_p2) target bundleno = 296 (0x128), region = 28  ;;  %p136_p3 = scmp.lt.s32.totalorder (!%p114_p2), %s627_s13, 63  ;;  %681 = vmatprep.subr.bf16.mxu0 (!%p114_p2), %v753_v0  ;;  %729 = vmatprep.subr.bf16.mxu1 (!%p114_p2), %v753_v0  ;;  %v756_v3 = vld [vmem:[%s994_s1 + $0x18] sm:$0xff] (!%p114_p2)   ;;  %v757_v6 = vld [vmem:[%s994_s1 + $0x20] sm:$0xff] (!%p114_p2)   ;;  %v758_v7 = vld [vmem:[%s994_s1 + $0x28] sm:$0xff] (!%p114_p2)  }
   0x7   : > { %682 = vmatpush3.bf16.msra.mxu0 (!%p114_p2), %v753_v0  ;;  %737 = vmatpush3.bf16.msra.mxu1 (!%p114_p2), %v753_v0  ;;  %v759_v8 = vld [vmem:[%s994_s1 + $0x30] sm:$0xff] (!%p114_p2)   ;;  %v760_v9 = vld [vmem:[%s994_s1 + $0x38] sm:$0xff] (!%p114_p2)  }
   0x8   : > { %683 = vmatprep.subr.bf16.mxu0 (!%p114_p2), %v754_v1  ;;  %730 = vmatprep.subr.bf16.mxu1 (!%p114_p2), %v754_v1 }
   0xb   : > { %684 = vmatpush3.bf16.msra.mxu0 (!%p114_p2), %v754_v1  ;;  %738 = vmatpush3.bf16.msra.mxu1 (!%p114_p2), %v754_v1 }
   0xc   : > { %685 = vmatprep.subr.bf16.mxu0 (!%p114_p2), %v755_v2  ;;  %731 = vmatprep.subr.bf16.mxu1 (!%p114_p2), %v755_v2 }
   0xd   : > { %s997_s13 = smov (!%p136_p3, %s627_s13), 63 }
   0xe   : > { %s628_s18 = sshll.u32 %s997_s13, 2  ;;  %s630_s4 = sshll.u32 %s997_s13, 3 }
   0xf   : > { %s887_s21 = scalar_lea.vmem %s993_s0, %s628_s18  ;;  %686 = vmatpush3.bf16.msra.mxu0 %v755_v2  ;;  %739 = vmatpush3.bf16.msra.mxu1 %v755_v2  ;;  %s924_s7 = scalar_lea.vmem %s995_s2, %s630_s4 }
  0x10   : > { %v761_v4 = vld [vmem:[%s887_s21] sm:$0xff]   ;;  %687 = vmatprep.subr.bf16.mxu0 %v756_v3  ;;  %732 = vmatprep.subr.bf16.mxu1 %v756_v3  ;;  %v763_v10 = vld [vmem:[%s887_s21 + $0x8] sm:$0xff]   ;;  %v765_v12 = vld [vmem:[%s887_s21 + $0x10] sm:$0xff]  }
  0x11   : > { %v762_v5 = vld [vmem:[%s887_s21 + $0x40] sm:$0xff]   ;;  %697 = vmatprep.mubr.bf16.mxu0 %v761_v4  ;;  %v764_v11 = vld [vmem:[%s887_s21 + $0x48] sm:$0xff]   ;;  %v766_v13 = vld [vmem:[%s887_s21 + $0x50] sm:$0xff]  }
  0x12   : > { %713 = vmatprep.mubr.bf16.mxu1 %v762_v5  ;;  %v767_v14 = vld [vmem:[%s887_s21 + $0x18] sm:$0xff]   ;;  %v769_v16 = vld [vmem:[%s887_s21 + $0x20] sm:$0xff]   ;;  %v771_v18 = vld [vmem:[%s887_s21 + $0x28] sm:$0xff]  }
  0x13   : > { %688 = vmatpush3.bf16.msra.mxu0 %v756_v3  ;;  %740 = vmatpush3.bf16.msra.mxu1 %v756_v3  ;;  %v768_v15 = vld [vmem:[%s887_s21 + $0x58] sm:$0xff]   ;;  %v770_v17 = vld [vmem:[%s887_s21 + $0x60] sm:$0xff]   ;;  %v772_v19 = vld [vmem:[%s887_s21 + $0x68] sm:$0xff]  }
  0x14   : > { %689 = vmatprep.subr.bf16.mxu0 %v757_v6  ;;  %733 = vmatprep.subr.bf16.mxu1 %v757_v6  ;;  %v773_v20 = vld [vmem:[%s887_s21 + $0x30] sm:$0xff]   ;;  %v775_v22 = vld [vmem:[%s887_s21 + $0x38] sm:$0xff]  }
  0x15   : > { %v774_v21 = vld [vmem:[%s887_s21 + $0x70] sm:$0xff]   ;;  %v776_v23 = vld [vmem:[%s887_s21 + $0x78] sm:$0xff]  }
  0x17   : > { %690 = vmatpush3.bf16.msra.mxu0 %v757_v6  ;;  %741 = vmatpush3.bf16.msra.mxu1 %v757_v6 }
  0x18   : > { %691 = vmatprep.subr.bf16.mxu0 %v758_v7  ;;  %734 = vmatprep.subr.bf16.mxu1 %v758_v7 }
  0x1b   : > { %692 = vmatpush3.bf16.msra.mxu0 %v758_v7  ;;  %742 = vmatpush3.bf16.msra.mxu1 %v758_v7 }
  0x1c   : > { %693 = vmatprep.subr.bf16.mxu0 %v759_v8  ;;  %735 = vmatprep.subr.bf16.mxu1 %v759_v8 }
  0x1f   : > { %694 = vmatpush3.bf16.msra.mxu0 %v759_v8  ;;  %743 = vmatpush3.bf16.msra.mxu1 %v759_v8 }
  0x20   : > { %695 = vmatprep.subr.bf16.mxu0 %v760_v9  ;;  %736 = vmatprep.subr.bf16.mxu1 %v760_v9 }
  0x23   : > { %696 = vmatpush3.bf16.msra.mxu0 %v760_v9  ;;  %744 = vmatpush3.bf16.msra.mxu1 %v760_v9 }
  0x26   : > { %698 = vmatmul.mubr.bf16.vlgmr.msra.gmra.mrb[0].mxu0 %v763_v10  ;;  %714 = vmatmul.mubr.bf16.vlgmr.msra.gmra.mrb[0].mxu1 %v764_v11 }
  0x27   : > { %701 = vmatprep.mubr.bf16.mxu0 %v765_v12  ;;  %717 = vmatprep.mubr.bf16.mxu1 %v766_v13 }
  0x2e   : > { %702 = vmatmul.mubr.bf16.gmra.mrb[4].mxu0 %v767_v14  ;;  %718 = vmatmul.mubr.bf16.gmra.mrb[4].mxu1 %v768_v15 }
  0x2f   : > { %705 = vmatprep.mubr.bf16.mxu0 %v769_v16  ;;  %721 = vmatprep.mubr.bf16.mxu1 %v770_v17 }
  0x36   : > { %706 = vmatmul.mubr.bf16.gmra.mrb[8].mxu0 %v771_v18  ;;  %722 = vmatmul.mubr.bf16.gmra.mrb[8].mxu1 %v772_v19 }
  0x37   : > { %709 = vmatprep.mubr.bf16.mxu0 %v773_v20  ;;  %725 = vmatprep.mubr.bf16.mxu1 %v774_v21 }
  0x3e   : > { %710 = vmatmul.mubr.bf16.gmra.mrb[12].mxu0 %v775_v22  ;;  %726 = vmatmul.mubr.bf16.gmra.mrb[12].mxu1 %v776_v23 }
  0xf9   : > { %v699_v24 = vpop.f32.mrb[0].mxu0  ;;  %v715_v25 = vpop.f32.mrb[0].mxu1 }
  0xfa   : > { %777 = vtanh.f32 %v699_v24  ;;  %v374_v26 = vpop.f32.mrb[1].mxu0  ;;  %v438_v27 = vpop.f32.mrb[1].mxu1 }
  0xfb   : > { %779 = vtanh.f32 %v715_v25  ;;  %v700_v28 = vpop.f32.mrb[2].mxu0  ;;  %v716_v29 = vpop.f32.mrb[2].mxu1 }
  0xfc   : > { %781 = vtanh.f32 %v374_v26  ;;  %v377_v30 = vpop.f32.mrb[3].mxu0  ;;  %v441_v31 = vpop.f32.mrb[3].mxu1 }
  0xfd   : > { %783 = vtanh.f32 %v438_v27 }
  0xfe   : > { %785 = vtanh.f32 %v700_v28 }
  0xff   : > { %787 = vtanh.f32 %v716_v29 }
 0x100   : > { %789 = vtanh.f32 %v377_v30 }
 0x101   : > { %791 = vtanh.f32 %v441_v31  ;;  %v703_v32 = vpop.f32.mrb[4].mxu0  ;;  %v719_v33 = vpop.f32.mrb[4].mxu1 }
 0x102   : > { %793 = vtanh.f32 %v703_v32  ;;  %v390_v34 = vpop.f32.mrb[5].mxu0  ;;  %v454_v35 = vpop.f32.mrb[5].mxu1 }
 0x103   : > { %795 = vtanh.f32 %v719_v33  ;;  %v704_v36 = vpop.f32.mrb[6].mxu0  ;;  %v720_v37 = vpop.f32.mrb[6].mxu1 }
 0x104   : > { %v778_v38 = vpop.eup %777  ;;  %797 = vtanh.f32 %v390_v34  ;;  %v393_v39 = vpop.f32.mrb[7].mxu0 }
 0x105   : > { %v457_v40 = vpop.f32.mrb[7].mxu1  ;;  %v780_v41 = vpop.eup %779  ;;  %536 = vst.msk [vmem:[%s924_s7 + $0x10] sm:$0xff] %vm533_vm0, %v778_v38  ;;  %799 = vtanh.f32 %v454_v35 }
 0x106   : > { %v782_v42 = vpop.eup %781  ;;  %552 = vst.msk [vmem:[%s924_s7 + $0x90] sm:$0xff] %vm533_vm0, %v780_v41  ;;  %801 = vtanh.f32 %v704_v36 }
 0x107   : > { %v784_v43 = vpop.eup %783  ;;  %534 = vst.msk [vmem:[%s924_s7] sm:$0xff] %vm533_vm0, %v782_v42  ;;  %803 = vtanh.f32 %v720_v37 }
 0x108   : > { %v786_v44 = vpop.eup %785  ;;  %550 = vst.msk [vmem:[%s924_s7 + $0x80] sm:$0xff] %vm533_vm0, %v784_v43  ;;  %805 = vtanh.f32 %v393_v39 }
 0x109   : > { %v788_v45 = vpop.eup %787  ;;  %537 = vst.msk [vmem:[%s924_s7 + $0x18] sm:$0xff] %vm533_vm0, %v786_v44  ;;  %807 = vtanh.f32 %v457_v40  ;;  %v707_v46 = vpop.f32.mrb[8].mxu0 }
 0x10a   : > { %v723_v47 = vpop.f32.mrb[8].mxu1  ;;  %v790_v48 = vpop.eup %789  ;;  %553 = vst.msk [vmem:[%s924_s7 + $0x98] sm:$0xff] %vm533_vm0, %v788_v45  ;;  %809 = vtanh.f32 %v707_v46 }
 0x10b   : > { %v406_v49 = vpop.f32.mrb[9].mxu0  ;;  %v470_v50 = vpop.f32.mrb[9].mxu1  ;;  %535 = vst.msk [vmem:[%s924_s7 + $0x8] sm:$0xff] %vm533_vm0, %v790_v48  ;;  %811 = vtanh.f32 %v723_v47 }
 0x10c   : > { %v792_v51 = vpop.eup %791  ;;  %v708_v52 = vpop.f32.mrb[10].mxu0  ;;  %813 = vtanh.f32 %v406_v49 }
 0x10d   : > { %v724_v53 = vpop.f32.mrb[10].mxu1  ;;  %v794_v54 = vpop.eup %793  ;;  %551 = vst.msk [vmem:[%s924_s7 + $0x88] sm:$0xff] %vm533_vm0, %v792_v51  ;;  %815 = vtanh.f32 %v470_v50 }
 0x10e   : > { %v409_v55 = vpop.f32.mrb[11].mxu0  ;;  %v473_v56 = vpop.f32.mrb[11].mxu1  ;;  %540 = vst.msk [vmem:[%s924_s7 + $0x30] sm:$0xff] %vm533_vm0, %v794_v54  ;;  %817 = vtanh.f32 %v708_v52 }
 0x10f   : > { %v796_v57 = vpop.eup %795  ;;  %819 = vtanh.f32 %v724_v53 }
 0x110   : > { %v798_v58 = vpop.eup %797  ;;  %556 = vst.msk [vmem:[%s924_s7 + $0xb0] sm:$0xff] %vm533_vm0, %v796_v57  ;;  %821 = vtanh.f32 %v409_v55 }
 0x111   : > { %v800_v59 = vpop.eup %799  ;;  %538 = vst.msk [vmem:[%s924_s7 + $0x20] sm:$0xff] %vm533_vm0, %v798_v58  ;;  %823 = vtanh.f32 %v473_v56  ;;  %v711_v62 = vpop.f32.mrb[12].mxu0 }
 0x112   : > { %v802_v60 = vpop.eup %801  ;;  %554 = vst.msk [vmem:[%s924_s7 + $0xa0] sm:$0xff] %vm533_vm0, %v800_v59  ;;  %v727_v63 = vpop.f32.mrb[12].mxu1  ;;  %825 = vtanh.f32 %v711_v62 }
 0x113   : > { %v804_v61 = vpop.eup %803  ;;  %541 = vst.msk [vmem:[%s924_s7 + $0x38] sm:$0xff] %vm533_vm0, %v802_v60  ;;  %v422_v1 = vpop.f32.mrb[13].mxu0  ;;  %827 = vtanh.f32 %v727_v63 }
 0x114   : > { %v806_v0 = vpop.eup %805  ;;  %557 = vst.msk [vmem:[%s924_s7 + $0xb8] sm:$0xff] %vm533_vm0, %v804_v61  ;;  %v486_v2 = vpop.f32.mrb[13].mxu1  ;;  %829 = vtanh.f32 %v422_v1 }
 0x115   : > { %v808_v3 = vpop.eup %807  ;;  %539 = vst.msk [vmem:[%s924_s7 + $0x28] sm:$0xff] %vm533_vm0, %v806_v0  ;;  %v712_v4 = vpop.f32.mrb[14].mxu0  ;;  %831 = vtanh.f32 %v486_v2 }
 0x116   : > { %v728_v5 = vpop.f32.mrb[14].mxu1  ;;  %v810_v6 = vpop.eup %809  ;;  %555 = vst.msk [vmem:[%s924_s7 + $0xa8] sm:$0xff] %vm533_vm0, %v808_v3  ;;  %833 = vtanh.f32 %v712_v4 }
 0x117   : > { %v425_v7 = vpop.f32.mrb[15].mxu0  ;;  %v489_v8 = vpop.f32.mrb[15].mxu1  ;;  %544 = vst.msk [vmem:[%s924_s7 + $0x50] sm:$0xff] %vm533_vm0, %v810_v6  ;;  %835 = vtanh.f32 %v728_v5 }
 0x118   : > { %v812_v9 = vpop.eup %811  ;;  %837 = vtanh.f32 %v425_v7 }
 0x119   : > { %v814_v10 = vpop.eup %813  ;;  %560 = vst.msk [vmem:[%s924_s7 + $0xd0] sm:$0xff] %vm533_vm0, %v812_v9  ;;  %839 = vtanh.f32 %v489_v8 }
 0x11a   : > { %v816_v11 = vpop.eup %815  ;;  %542 = vst.msk [vmem:[%s924_s7 + $0x40] sm:$0xff] %vm533_vm0, %v814_v10 }
 0x11b   : > { %v818_v12 = vpop.eup %817  ;;  %558 = vst.msk [vmem:[%s924_s7 + $0xc0] sm:$0xff] %vm533_vm0, %v816_v11 }
 0x11c   : > { %v820_v13 = vpop.eup %819  ;;  %545 = vst.msk [vmem:[%s924_s7 + $0x58] sm:$0xff] %vm533_vm0, %v818_v12 }
 0x11d   : > { %v822_v14 = vpop.eup %821  ;;  %561 = vst.msk [vmem:[%s924_s7 + $0xd8] sm:$0xff] %vm533_vm0, %v820_v13 }
 0x11e   : > { %v824_v15 = vpop.eup %823  ;;  %543 = vst.msk [vmem:[%s924_s7 + $0x48] sm:$0xff] %vm533_vm0, %v822_v14 }
 0x11f   : > { %v826_v16 = vpop.eup %825  ;;  %559 = vst.msk [vmem:[%s924_s7 + $0xc8] sm:$0xff] %vm533_vm0, %v824_v15 }
 0x120   : > { %v828_v17 = vpop.eup %827  ;;  %548 = vst.msk [vmem:[%s924_s7 + $0x70] sm:$0xff] %vm533_vm0, %v826_v16 }
 0x121   : > { %v830_v18 = vpop.eup %829  ;;  %564 = vst.msk [vmem:[%s924_s7 + $0xf0] sm:$0xff] %vm533_vm0, %v828_v17 }
 0x122   : > { %v832_v19 = vpop.eup %831  ;;  %546 = vst.msk [vmem:[%s924_s7 + $0x60] sm:$0xff] %vm533_vm0, %v830_v18 }
 0x123   : > { %v834_v20 = vpop.eup %833  ;;  %562 = vst.msk [vmem:[%s924_s7 + $0xe0] sm:$0xff] %vm533_vm0, %v832_v19 }
 0x124   : > { %v836_v21 = vpop.eup %835  ;;  %549 = vst.msk [vmem:[%s924_s7 + $0x78] sm:$0xff] %vm533_vm0, %v834_v20 }
 0x125   : > { %v838_v22 = vpop.eup %837  ;;  %565 = vst.msk [vmem:[%s924_s7 + $0xf8] sm:$0xff] %vm533_vm0, %v836_v21 }
 0x126   : > { %v840_v23 = vpop.eup %839  ;;  %547 = vst.msk [vmem:[%s924_s7 + $0x68] sm:$0xff] %vm533_vm0, %v838_v22 }
 0x127   : > { %563 = vst.msk [vmem:[%s924_s7 + $0xe8] sm:$0xff] %vm533_vm0, %v840_v23 }
 0x128 PF: > { %s12_s9 = sadd.s32 1, %s847_s9  }
 0x129   : > { %p9_p4 = scmp.ge.s32.totalorder %s12_s9, 4  }
 0x12b   :  { %11 = sbr.rel (!%p9_p4) target bundleno = 1 (0x1), region = 58 }

</bundles_post_ra>
